<compile_context>
chip_gen: v7x
topology: tpu7x:2x2x1
jax: 0.10.0
libtpu: 0.0.40
codegen_flags: <defaults>
</compile_context>

<pallas_src>
import jax
import jax.numpy as jnp
from jax.experimental import pallas as pl
from jax.experimental.pallas import tpu as pltpu

# ----- problem sizes (small, consistent with the module) -----
B, C_IN, H, W = 2, 4, 16, 16
KH, KW = 3, 3
FEAT = 512
N_CLASS = 10
N_REG = 1
N_HEAD = N_CLASS + N_REG        # 11
N_HEAD_PAD = 16                 # small lane pad for the fused head (not 128)
PATCH = KH * KW * C_IN          # 36
PATCH_PAD = 128                 # lane-dense padded contraction dim
HW = H * W                      # 256
M = B * HW                      # 512  (full-batch im2col rows)


# --------------------------------------------------------------------------
# Fused kernel: im2col-matmul conv -> bias -> ReLU -> sum-pool GAP -> fused heads
# One grid step, whole-array blocks (total VMEM footprint ~1.3 MiB).
# --------------------------------------------------------------------------
def fused_kernel(p_ref, wc_ref, bc_ref, sum_ref, wh_ref, bh_ref, out_ref):
    # p_ref:   (M, PATCH_PAD)      bf16  zero-padded im2col patches, full batch
    # wc_ref:  (PATCH_PAD, FEAT)   bf16  zero-padded flattened conv weight (HWIO order)
    # bc_ref:  (1, FEAT)           f32   conv bias
    # sum_ref: (B, M)              bf16  0/1 block-diagonal sum-pool matrix
    # wh_ref:  (FEAT, N_HEAD_PAD)  bf16  [classifier | regressor | pad] weights, 1/HW folded in
    # bh_ref:  (1, N_HEAD_PAD)     f32   padded head bias
    # out_ref: (B, N_HEAD_PAD)     f32   fused head output
    acc = jnp.dot(p_ref[...], wc_ref[...],
                  preferred_element_type=jnp.float32)            # (M, FEAT)  MXU bf16, f32 acc
    act = jnp.maximum(acc + bc_ref[...], 0.0)                    # bias + ReLU in f32 (v5e-safe VPU)
    feats = jnp.dot(sum_ref[...], act.astype(jnp.bfloat16),
                    preferred_element_type=jnp.float32)          # (B, FEAT)  sum-pool on MXU (bf16xbf16)
    out_ref[...] = jnp.dot(feats.astype(jnp.bfloat16), wh_ref[...],
                           preferred_element_type=jnp.float32) + bh_ref[...]


def multitask_fused(patches_bf16, w_conv_bf16, b_conv, sum_mat_bf16, w_heads_bf16, b_heads):
    flops = 2 * M * PATCH_PAD * FEAT + 2 * B * M * FEAT + 2 * B * FEAT * N_HEAD_PAD
    bytes_accessed = (patches_bf16.size * 2 + w_conv_bf16.size * 2 + b_conv.size * 4
                      + sum_mat_bf16.size * 2 + w_heads_bf16.size * 2 + b_heads.size * 4
                      + B * N_HEAD_PAD * 4)
    return pl.pallas_call(
        fused_kernel,
        out_shape=jax.ShapeDtypeStruct((B, N_HEAD_PAD), jnp.float32),
        grid=(1,),
        in_specs=[
            pl.BlockSpec((M, PATCH_PAD), lambda i: (0, 0)),
            pl.BlockSpec((PATCH_PAD, FEAT), lambda i: (0, 0)),
            pl.BlockSpec((1, FEAT), lambda i: (0, 0)),
            pl.BlockSpec((B, M), lambda i: (0, 0)),
            pl.BlockSpec((FEAT, N_HEAD_PAD), lambda i: (0, 0)),
            pl.BlockSpec((1, N_HEAD_PAD), lambda i: (0, 0)),
        ],
        out_specs=pl.BlockSpec((B, N_HEAD_PAD), lambda i: (0, 0)),
        compiler_params=pltpu.CompilerParams(
            dimension_semantics=("arbitrary",)),
        cost_estimate=pl.CostEstimate(flops=flops, transcendentals=0,
                                      bytes_accessed=bytes_accessed),
    )(patches_bf16, w_conv_bf16, b_conv, sum_mat_bf16, w_heads_bf16, b_heads)


# --------------------------------------------------------------------------
# Glue: im2col (pad + shifted slices) + lane pad, all fused under jax.jit
# --------------------------------------------------------------------------
def im2col_pad_bf16(x_nhwc):
    xp = jnp.pad(x_nhwc, ((0, 0), (1, 1), (1, 1), (0, 0)))
    cols = []
    for kh in range(KH):
        for kw in range(KW):
            cols.append(xp[:, kh:kh + H, kw:kw + W, :])         # (B, H, W, C_IN)
    patches = jnp.stack(cols, axis=3).reshape(M, PATCH)          # (M, 36)
    patches = jnp.pad(patches, ((0, 0), (0, PATCH_PAD - PATCH))) # lane-dense (M, 128)
    return patches.astype(jnp.bfloat16)


@jax.jit
def multitask_forward(x_nchw, params):
    x_nhwc = jnp.transpose(x_nchw, (0, 2, 3, 1))                 # NCHW -> NHWC
    patches = im2col_pad_bf16(x_nhwc)
    out = multitask_fused(patches, params["w_conv_pad_bf16"], params["b_conv"],
                          params["sum_mat_bf16"], params["w_heads_bf16"], params["b_heads"])
    cls_out = out[:, :N_CLASS]
    reg_out = out[:, N_CLASS:N_HEAD]
    return cls_out, reg_out


def make_params(key):
    ks = jax.random.split(key, 6)
    w_conv_oihw = 0.05 * jax.random.normal(ks[0], (FEAT, C_IN, KH, KW), jnp.float32)
    b_conv = 0.05 * jax.random.normal(ks[1], (FEAT,), jnp.float32)
    wc = 0.05 * jax.random.normal(ks[2], (N_CLASS, FEAT), jnp.float32)   # torch Linear (out, in)
    bc = 0.05 * jax.random.normal(ks[3], (N_CLASS,), jnp.float32)
    wr = 0.05 * jax.random.normal(ks[4], (N_REG, FEAT), jnp.float32)
    br = 0.05 * jax.random.normal(ks[5], (N_REG,), jnp.float32)

    # OIHW -> HWIO -> flattened (KH*KW*C_IN, FEAT) matching im2col (kh, kw, c) order,
    # zero-padded along the contraction dim to PATCH_PAD=128.
    w_hwio = jnp.transpose(w_conv_oihw, (2, 3, 1, 0))
    w_conv_flat = w_hwio.reshape(PATCH, FEAT)
    w_conv_pad = jnp.zeros((PATCH_PAD, FEAT), jnp.float32).at[:PATCH].set(w_conv_flat)

    # Fused head: classifier + regressor concatenated, 1/HW (mean-pool) folded in (f32),
    # padded only to 16 lanes, then cast to bf16.
    w_heads = jnp.zeros((FEAT, N_HEAD_PAD), jnp.float32)
    w_heads = w_heads.at[:, :N_CLASS].set(wc.T / HW).at[:, N_CLASS:N_HEAD].set(wr.T / HW)
    b_heads = jnp.zeros((1, N_HEAD_PAD), jnp.float32)
    b_heads = b_heads.at[0, :N_CLASS].set(bc).at[0, N_CLASS:N_HEAD].set(br)

    # Block-diagonal 0/1 sum-pool matrix (exact in bf16): row b sums act rows [b*HW, (b+1)*HW).
    row = jnp.arange(B)[:, None]
    col = jnp.arange(M)[None, :]
    sum_mat = jnp.where(col // HW == row, 1.0, 0.0)

    return {
        "w_hwio": w_hwio,
        "w_conv_pad_bf16": w_conv_pad.astype(jnp.bfloat16),
        "b_conv": b_conv.reshape(1, FEAT),
        "sum_mat_bf16": sum_mat.astype(jnp.bfloat16),
        "w_heads_bf16": w_heads.astype(jnp.bfloat16),
        "b_heads": b_heads,
        "wc": wc, "bc": bc, "wr": wr, "br": br,
    }


# --------------------------------------------------------------------------
# References
# --------------------------------------------------------------------------
@jax.jit
def reference_forward_bf16(x_nchw, params):
    # Same math as the kernel (bf16 MXU operands, f32 accumulation) in plain JAX.
    x_nhwc = jnp.transpose(x_nchw, (0, 2, 3, 1))
    patches = im2col_pad_bf16(x_nhwc)
    acc = jnp.dot(patches, params["w_conv_pad_bf16"], preferred_element_type=jnp.float32)
    act = jnp.maximum(acc + params["b_conv"], 0.0)
    feats = jnp.dot(params["sum_mat_bf16"], act.astype(jnp.bfloat16),
                    preferred_element_type=jnp.float32)
    heads = jnp.dot(feats.astype(jnp.bfloat16), params["w_heads_bf16"],
                    preferred_element_type=jnp.float32) + params["b_heads"]
    return heads[:, :N_CLASS], heads[:, N_CLASS:N_HEAD]


@jax.jit
def reference_forward_f32(x_nchw, params):
    # Full-f32 equivalent of the PyTorch module (conv+ReLU+GAP tail, two Linear heads).
    x_nhwc = jnp.transpose(x_nchw, (0, 2, 3, 1))
    conv = jax.lax.conv_general_dilated(
        x_nhwc, params["w_hwio"], window_strides=(1, 1), padding="SAME",
        dimension_numbers=("NHWC", "HWIO", "NHWC"))
    act = jnp.maximum(conv + params["b_conv"][0], 0.0)
    feats = jnp.mean(act, axis=(1, 2))                           # AdaptiveAvgPool2d(1) + flatten
    cls_out = feats @ params["wc"].T + params["bc"]
    reg_out = feats @ params["wr"].T + params["br"]
    return cls_out, reg_out


if __name__ == "__main__":
    key = jax.random.PRNGKey(0)
    k_x, k_p = jax.random.split(key)
    x = jax.random.normal(k_x, (B, C_IN, H, W), jnp.float32)     # PyTorch-style NCHW input
    params = make_params(k_p)

    cls_out, reg_out = multitask_forward(x, params)
    jax.block_until_ready((cls_out, reg_out))

    assert cls_out.shape == (B, N_CLASS) and reg_out.shape == (B, N_REG)

    # Tight check against a plain-JAX mirror of the kernel math (bf16 operands, f32 acc).
    rc, rr = reference_forward_bf16(x, params)
    assert jnp.allclose(cls_out, rc, atol=1e-3, rtol=1e-3)
    assert jnp.allclose(reg_out, rr, atol=1e-3, rtol=1e-3)

    # Looser sanity check against the full-f32 module semantics (bf16 rounding only).
    fc, fr = reference_forward_f32(x, params)
    assert jnp.allclose(cls_out, fc, atol=3e-2, rtol=3e-2)
    assert jnp.allclose(reg_out, fr, atol=3e-2, rtol=3e-2)

    print("KERNEL_OK")
</pallas_src>

<mosaic_0001>
module attributes {stable_mosaic.version = 11 : i64} {
  func.func @fused_kernel(%arg0: i32, %arg1: memref<512x128xbf16, #tpu.memory_space<vmem>>, %arg2: memref<128x512xbf16, #tpu.memory_space<vmem>>, %arg3: memref<1x512xf32, #tpu.memory_space<vmem>>, %arg4: memref<2x512xbf16, #tpu.memory_space<vmem>>, %arg5: memref<512x16xbf16, #tpu.memory_space<vmem>>, %arg6: memref<1x16xf32, #tpu.memory_space<vmem>>, %arg7: memref<2x16xf32, #tpu.memory_space<vmem>>) attributes {dimension_semantics = [#tpu.dimension_semantics<arbitrary>], iteration_bounds = array<i64: 1>, scalar_prefetch = 0 : i64, scratch_operands = 0 : i64, tpu.core_type = #tpu.core_type<tc>, window_params = [{pipeline_mode = #tpu.pipeline_mode<synchronous>, transform_indices = @transform_0, window_bounds = array<i64: 512, 128>}, {pipeline_mode = #tpu.pipeline_mode<synchronous>, transform_indices = @transform_1, window_bounds = array<i64: 128, 512>}, {pipeline_mode = #tpu.pipeline_mode<synchronous>, transform_indices = @transform_2, window_bounds = array<i64: 1, 512>}, {pipeline_mode = #tpu.pipeline_mode<synchronous>, transform_indices = @transform_3, window_bounds = array<i64: 2, 512>}, {pipeline_mode = #tpu.pipeline_mode<synchronous>, transform_indices = @transform_4, window_bounds = array<i64: 512, 16>}, {pipeline_mode = #tpu.pipeline_mode<synchronous>, transform_indices = @transform_5, window_bounds = array<i64: 1, 16>}, {pipeline_mode = #tpu.pipeline_mode<synchronous>, transform_indices = @transform_6, window_bounds = array<i64: 2, 16>}]} {
    %c0 = arith.constant 0 : index
    %c0_0 = arith.constant 0 : index
    %0 = vector.load %arg1[%c0, %c0_0] : memref<512x128xbf16, #tpu.memory_space<vmem>>, vector<512x128xbf16>
    %c0_1 = arith.constant 0 : index
    %c0_2 = arith.constant 0 : index
    %1 = vector.load %arg2[%c0_1, %c0_2] : memref<128x512xbf16, #tpu.memory_space<vmem>>, vector<128x512xbf16>
    %cst = arith.constant dense<0.000000e+00> : vector<512x512xf32>
    %2 = tpu.matmul %0, %1, %cst {dimension_numbers = #tpu.dot_dimension_numbers<[1], [0], [0], [1], [0, 0, 1, 1], [], []>} : vector<512x128xbf16>, vector<128x512xbf16>, vector<512x512xf32> -> vector<512x512xf32>
    %c0_3 = arith.constant 0 : index
    %c0_4 = arith.constant 0 : index
    %3 = vector.load %arg3[%c0_3, %c0_4] : memref<1x512xf32, #tpu.memory_space<vmem>>, vector<1x512xf32>
    %4 = vector.broadcast %3 : vector<1x512xf32> to vector<512x512xf32>
    %5 = arith.addf %2, %4 : vector<512x512xf32>
    %cst_5 = arith.constant 0.000000e+00 : f32
    %6 = vector.broadcast %cst_5 : f32 to vector<512x512xf32>
    %7 = arith.maximumf %5, %6 : vector<512x512xf32>
    %c0_6 = arith.constant 0 : index
    %c0_7 = arith.constant 0 : index
    %8 = vector.load %arg4[%c0_6, %c0_7] : memref<2x512xbf16, #tpu.memory_space<vmem>>, vector<2x512xbf16>
    %9 = arith.truncf %7 : vector<512x512xf32> to vector<512x512xbf16>
    %cst_8 = arith.constant dense<0.000000e+00> : vector<2x512xf32>
    %10 = tpu.matmul %8, %9, %cst_8 {dimension_numbers = #tpu.dot_dimension_numbers<[1], [0], [0], [1], [0, 0, 1, 1], [], []>} : vector<2x512xbf16>, vector<512x512xbf16>, vector<2x512xf32> -> vector<2x512xf32>
    %11 = arith.truncf %10 : vector<2x512xf32> to vector<2x512xbf16>
    %c0_9 = arith.constant 0 : index
    %c0_10 = arith.constant 0 : index
    %12 = vector.load %arg5[%c0_9, %c0_10] : memref<512x16xbf16, #tpu.memory_space<vmem>>, vector<512x16xbf16>
    %cst_11 = arith.constant dense<0.000000e+00> : vector<2x16xf32>
    %13 = tpu.matmul %11, %12, %cst_11 {dimension_numbers = #tpu.dot_dimension_numbers<[1], [0], [0], [1], [0, 0, 1, 1], [], []>} : vector<2x512xbf16>, vector<512x16xbf16>, vector<2x16xf32> -> vector<2x16xf32>
    %c0_12 = arith.constant 0 : index
    %c0_13 = arith.constant 0 : index
    %14 = vector.load %arg6[%c0_12, %c0_13] : memref<1x16xf32, #tpu.memory_space<vmem>>, vector<1x16xf32>
    %15 = vector.broadcast %14 : vector<1x16xf32> to vector<2x16xf32>
    %16 = arith.addf %13, %15 : vector<2x16xf32>
    %c0_14 = arith.constant 0 : index
    %c0_15 = arith.constant 0 : index
    %17 = vector.load %arg7[%c0_14, %c0_15] : memref<2x16xf32, #tpu.memory_space<vmem>>, vector<2x16xf32>
    tpu.vector_store %arg7[%c0_14, %c0_15], %16 {strides = array<i32>} : memref<2x16xf32, #tpu.memory_space<vmem>>, vector<2x16xf32>,
    return
  }
  func.func @transform_0(%arg0: i32) -> (i32, i32) {
    %c0_i32 = arith.constant 0 : i32
    %c0_i32_0 = arith.constant 0 : i32
    %c0_i32_1 = arith.constant 0 : i32
    return %c0_i32, %c0_i32_0 : i32, i32
  }
  func.func @transform_1(%arg0: i32) -> (i32, i32) {
    %c0_i32 = arith.constant 0 : i32
    %c0_i32_0 = arith.constant 0 : i32
    %c0_i32_1 = arith.constant 0 : i32
    return %c0_i32, %c0_i32_0 : i32, i32
  }
  func.func @transform_2(%arg0: i32) -> (i32, i32) {
    %c0_i32 = arith.constant 0 : i32
    %c0_i32_0 = arith.constant 0 : i32
    %c0_i32_1 = arith.constant 0 : i32
    return %c0_i32, %c0_i32_0 : i32, i32
  }
  func.func @transform_3(%arg0: i32) -> (i32, i32) {
    %c0_i32 = arith.constant 0 : i32
    %c0_i32_0 = arith.constant 0 : i32
    %c0_i32_1 = arith.constant 0 : i32
    return %c0_i32, %c0_i32_0 : i32, i32
  }
  func.func @transform_4(%arg0: i32) -> (i32, i32) {
    %c0_i32 = arith.constant 0 : i32
    %c0_i32_0 = arith.constant 0 : i32
    %c0_i32_1 = arith.constant 0 : i32
    return %c0_i32, %c0_i32_0 : i32, i32
  }
  func.func @transform_5(%arg0: i32) -> (i32, i32) {
    %c0_i32 = arith.constant 0 : i32
    %c0_i32_0 = arith.constant 0 : i32
    %c0_i32_1 = arith.constant 0 : i32
    return %c0_i32, %c0_i32_0 : i32, i32
  }
  func.func @transform_6(%arg0: i32) -> (i32, i32) {
    %c0_i32 = arith.constant 0 : i32
    %c0_i32_0 = arith.constant 0 : i32
    %c0_i32_1 = arith.constant 0 : i32
    return %c0_i32, %c0_i32_0 : i32, i32
  }
}

</mosaic_0001>

<bundles_post_ra>
// kernel: multitask_forward.1
= control target key start
LH: loop header
LB: loop body
LE: loop exit
PB: predicated region body
PF: predicated region fallthrough
CT: control target
= control target key end

     0   :  { %v2395_v1 = vmov 0   ;;  %v122_v59 = vlaneseq  ;;  %vm2125_vm0 = vcmask 123904   ;;  %s3081_s1 = inlined_call_operand.vmem [shape: bf16[128,512], index: 1, kind: input, shape index: {}]   ;;  %s3082_s0 = inlined_call_operand.vmem [shape: bf16[512,128], index: 0, kind: input, shape index: {}]   ;;  %s3083_s2 = inlined_call_operand.vmem [shape: f32[1,512], index: 2, kind: input, shape index: {}]   ;;  %s3084_s3 = inlined_call_operand.vmem [shape: bf16[2,512], index: 3, kind: input, shape index: {}]   ;;  %s3085_s4 = inlined_call_operand.vmem [shape: bf16[512,16], index: 4, kind: input, shape index: {}]   ;;  %s3086_s5 = inlined_call_operand.vmem [shape: f32[1,16], index: 5, kind: input, shape index: {}]   ;;  %s3087_s6 = inlined_call_operand.vmem [shape: f32[2,16], index: 6, kind: output, shape index: {}]  }
   0x1   :  { %v2283_v0 = vld [vmem:[%s3081_s1 + $0x4] ss:$16 sps:$4 sm:$0xff]   ;;  %526 = vmatprep.mubr.bf16.mxu0 %v2395_v1  ;;  %879 = vmatprep.mubr.bf16.mxu1 %v2395_v1  ;;  %v2285_v2 = vld [vmem:[%s3081_s1 + $0xc] ss:$16 sps:$4 sm:$0xff]   ;;  %v2287_v3 = vld [vmem:[%s3081_s1] ss:$16 sps:$4 sm:$0xff]  }
   0x2   :  { %494 = vmatprep.subr.bf16.mxu0 %v2283_v0  ;;  %v2288_v4 = vld [vmem:[%s3081_s1 + $0x8] ss:$16 sps:$4 sm:$0xff]   ;;  %847 = vmatprep.subr.bf16.mxu1 %v2285_v2  ;;  %v2289_v5 = vld [vmem:[%s3081_s1 + $0x24] ss:$16 sps:$4 sm:$0xff]   ;;  %v2291_v6 = vld [vmem:[%s3081_s1 + $0x2c] ss:$16 sps:$4 sm:$0xff]  }
   0x3   :  { %495 = vmatpush1.bf16.msra.mxu0 %v2287_v3  ;;  %848 = vmatpush1.bf16.msra.mxu1 %v2288_v4  ;;  %v2293_v7 = vld [vmem:[%s3081_s1 + $0x20] ss:$16 sps:$4 sm:$0xff]   ;;  %v2294_v8 = vld [vmem:[%s3081_s1 + $0x28] ss:$16 sps:$4 sm:$0xff]   ;;  %v2295_v9 = vld [vmem:[%s3081_s1 + $0x44] ss:$16 sps:$4 sm:$0xff]  }
   0x4   :  { %496 = vmatprep.subr.bf16.mxu0 %v2289_v5  ;;  %849 = vmatprep.subr.bf16.mxu1 %v2291_v6  ;;  %v2297_v10 = vld [vmem:[%s3081_s1 + $0x4c] ss:$16 sps:$4 sm:$0xff]   ;;  %v2299_v11 = vld [vmem:[%s3081_s1 + $0x40] ss:$16 sps:$4 sm:$0xff]   ;;  %v2300_v12 = vld [vmem:[%s3081_s1 + $0x48] ss:$16 sps:$4 sm:$0xff]  }
   0x5   :  { %v2301_v13 = vld [vmem:[%s3081_s1 + $0x64] ss:$16 sps:$4 sm:$0xff]   ;;  %v2303_v14 = vld [vmem:[%s3081_s1 + $0x6c] ss:$16 sps:$4 sm:$0xff]   ;;  %v2305_v15 = vld [vmem:[%s3081_s1 + $0x60] ss:$16 sps:$4 sm:$0xff]  }
   0x6   :  { %v2306_v16 = vld [vmem:[%s3081_s1 + $0x68] ss:$16 sps:$4 sm:$0xff]   ;;  %v2307_v17 = vld [vmem:[%s3081_s1 + $0x84] ss:$16 sps:$4 sm:$0xff]   ;;  %v2309_v18 = vld [vmem:[%s3081_s1 + $0x8c] ss:$16 sps:$4 sm:$0xff]  }
   0x7   :  { %497 = vmatpush1.bf16.msra.mxu0 %v2293_v7  ;;  %850 = vmatpush1.bf16.msra.mxu1 %v2294_v8  ;;  %v2311_v19 = vld [vmem:[%s3081_s1 + $0x80] ss:$16 sps:$4 sm:$0xff]   ;;  %v2312_v20 = vld [vmem:[%s3081_s1 + $0x88] ss:$16 sps:$4 sm:$0xff]   ;;  %v2313_v21 = vld [vmem:[%s3081_s1 + $0xa4] ss:$16 sps:$4 sm:$0xff]  }
   0x8   :  { %498 = vmatprep.subr.bf16.mxu0 %v2295_v9  ;;  %851 = vmatprep.subr.bf16.mxu1 %v2297_v10  ;;  %v2315_v22 = vld [vmem:[%s3081_s1 + $0xac] ss:$16 sps:$4 sm:$0xff]   ;;  %v2317_v23 = vld [vmem:[%s3081_s1 + $0xa0] ss:$16 sps:$4 sm:$0xff]   ;;  %v2318_v24 = vld [vmem:[%s3081_s1 + $0xa8] ss:$16 sps:$4 sm:$0xff]  }
   0x9   :  { %v2319_v25 = vld [vmem:[%s3081_s1 + $0xc4] ss:$16 sps:$4 sm:$0xff]   ;;  %v2321_v26 = vld [vmem:[%s3081_s1 + $0xcc] ss:$16 sps:$4 sm:$0xff]   ;;  %v2323_v27 = vld [vmem:[%s3081_s1 + $0xc0] ss:$16 sps:$4 sm:$0xff]  }
   0xa   :  { %v2324_v28 = vld [vmem:[%s3081_s1 + $0xc8] ss:$16 sps:$4 sm:$0xff]   ;;  %v2325_v29 = vld [vmem:[%s3081_s1 + $0xe4] ss:$16 sps:$4 sm:$0xff]   ;;  %v2327_v30 = vld [vmem:[%s3081_s1 + $0xec] ss:$16 sps:$4 sm:$0xff]  }
   0xb   :  { %499 = vmatpush1.bf16.msra.mxu0 %v2299_v11  ;;  %852 = vmatpush1.bf16.msra.mxu1 %v2300_v12  ;;  %v2329_v31 = vld [vmem:[%s3081_s1 + $0xe0] ss:$16 sps:$4 sm:$0xff]   ;;  %v2330_v32 = vld [vmem:[%s3081_s1 + $0xe8] ss:$16 sps:$4 sm:$0xff]   ;;  %v123_v60 = vshrl.u32 %v122_v59, 7 }
   0xc   :  { %500 = vmatprep.subr.bf16.mxu0 %v2301_v13  ;;  %853 = vmatprep.subr.bf16.mxu1 %v2303_v14  ;;  %v2331_v33 = vld [vmem:[%s3082_s0] sm:$0xff]   ;;  %v2332_v34 = vld [vmem:[%s3082_s0 + $0x8] sm:$0xff]   ;;  %v2333_v35 = vld [vmem:[%s3082_s0 + $0x10] sm:$0xff]  }
   0xd   :  { %v2334_v36 = vld [vmem:[%s3082_s0 + $0x18] sm:$0xff]   ;;  %v2335_v37 = vld [vmem:[%s3082_s0 + $0x20] sm:$0xff]   ;;  %v2336_v38 = vld [vmem:[%s3082_s0 + $0x28] sm:$0xff]   ;;  %v124_v62 = vsub.s32 0, %v123_v60  ;;  %v132_v63 = vsub.s32 2, %v123_v60  ;;  %v128_v2 = vsub.s32 1, %v123_v60 }
   0xe   :  { %v2337_v39 = vld [vmem:[%s3082_s0 + $0x30] sm:$0xff]   ;;  %v2338_v40 = vld [vmem:[%s3082_s0 + $0x38] sm:$0xff]   ;;  %v2339_v41 = vld [vmem:[%s3082_s0 + $0x40] sm:$0xff]   ;;  %v136_v3 = vsub.s32 3, %v123_v60 }
   0xf   :  { %501 = vmatpush1.bf16.msra.mxu0 %v2305_v15  ;;  %854 = vmatpush1.bf16.msra.mxu1 %v2306_v16  ;;  %v2340_v42 = vld [vmem:[%s3082_s0 + $0x48] sm:$0xff]   ;;  %v2341_v43 = vld [vmem:[%s3082_s0 + $0x50] sm:$0xff]   ;;  %v2342_v44 = vld [vmem:[%s3082_s0 + $0x58] sm:$0xff]  }
  0x10   :  { %502 = vmatprep.subr.bf16.mxu0 %v2307_v17  ;;  %855 = vmatprep.subr.bf16.mxu1 %v2309_v18  ;;  %v2343_v45 = vld [vmem:[%s3082_s0 + $0x60] sm:$0xff]   ;;  %v2344_v46 = vld [vmem:[%s3082_s0 + $0x68] sm:$0xff]   ;;  %v2345_v47 = vld [vmem:[%s3082_s0 + $0x70] sm:$0xff]  }
  0x11   :  { %v2346_v48 = vld [vmem:[%s3082_s0 + $0x78] sm:$0xff]   ;;  %v2347_v49 = vld [vmem:[%s3082_s0 + $0x80] sm:$0xff]   ;;  %v2348_v50 = vld [vmem:[%s3082_s0 + $0x88] sm:$0xff]  }
  0x12   :  { %v2349_v51 = vld [vmem:[%s3082_s0 + $0x90] sm:$0xff]   ;;  %v2350_v52 = vld [vmem:[%s3082_s0 + $0x98] sm:$0xff]   ;;  %v2351_v53 = vld [vmem:[%s3082_s0 + $0xa0] sm:$0xff]  }
  0x13   :  { %503 = vmatpush1.bf16.msra.mxu0 %v2311_v19  ;;  %856 = vmatpush1.bf16.msra.mxu1 %v2312_v20  ;;  %v2352_v54 = vld [vmem:[%s3082_s0 + $0xa8] sm:$0xff]   ;;  %v2353_v55 = vld [vmem:[%s3082_s0 + $0xb0] sm:$0xff]   ;;  %v2354_v56 = vld [vmem:[%s3082_s0 + $0xb8] sm:$0xff]   ;;  %v2396_v19 = vmov 1966171168  }
  0x14   :  { %504 = vmatprep.subr.bf16.mxu0 %v2313_v21  ;;  %857 = vmatprep.subr.bf16.mxu1 %v2315_v22  ;;  %v2355_v57 = vld [vmem:[%s3082_s0 + $0xc0] sm:$0xff]   ;;  %v2356_v58 = vld [vmem:[%s3082_s0 + $0xc8] sm:$0xff]   ;;  %v2357_v61 = vld [vmem:[%s3082_s0 + $0xd0] sm:$0xff]   ;;  %v1595_v20 = vunpack.c.l.s4 %v2396_v19 }
  0x15   :  { %v120_v0 = vld [vmem:[%s3083_s2] sm:$0xf]  ;;  %v2358_v14 = vld [vmem:[%s3082_s0 + $0xd8] sm:$0xff]  }
  0x16   :  { %v2666_v4 = vrot.slane %v120_v0, %v124_v62  ;;  %v2668_v5 = vrot.slane %v120_v0, %v132_v63  ;;  %v2670_v6 = vrot.slane %v120_v0, %v128_v2  ;;  %v2672_v7 = vrot.slane %v120_v0, %v136_v3 }
  0x17   :  { %505 = vmatpush1.bf16.msra.mxu0 %v2317_v23  ;;  %858 = vmatpush1.bf16.msra.mxu1 %v2318_v24 }
  0x18   :  { %506 = vmatprep.subr.bf16.mxu0 %v2319_v25  ;;  %859 = vmatprep.subr.bf16.mxu1 %v2321_v26 }
  0x1b   :  { %507 = vmatpush1.bf16.msra.mxu0 %v2323_v27  ;;  %860 = vmatpush1.bf16.msra.mxu1 %v2324_v28 }
  0x1c   :  { %508 = vmatprep.subr.bf16.mxu0 %v2325_v29  ;;  %861 = vmatprep.subr.bf16.mxu1 %v2327_v30 }
  0x1f   :  { %509 = vmatpush1.bf16.msra.mxu0 %v2329_v31  ;;  %862 = vmatpush1.bf16.msra.mxu1 %v2330_v32  ;;  %v1596_v32 = vunpack.c.0.s8 %v1595_v20 }
  0x22   :  { %527 = vmatmul.mubr.bf16.vlgmr.msra.gmra.mrb[0].mxu0 %v2331_v33  ;;  %880 = vmatmul.mubr.bf16.vlgmr.msra.gmra.mrb[0].mxu1 %v2331_v33 }
  0x23   :  { %536 = vmatprep.mubr.bf16.mxu0 %v2395_v1  ;;  %889 = vmatprep.mubr.bf16.mxu1 %v2395_v1 }
  0x2a   :  { %537 = vmatmul.mubr.bf16.gmra.mrb[4].mxu0 %v2332_v34  ;;  %890 = vmatmul.mubr.bf16.gmra.mrb[4].mxu1 %v2332_v34 }
  0x2b   :  { %546 = vmatprep.mubr.bf16.mxu0 %v2395_v1  ;;  %899 = vmatprep.mubr.bf16.mxu1 %v2395_v1 }
  0x32   :  { %547 = vmatmul.mubr.bf16.gmra.mrb[8].mxu0 %v2333_v35  ;;  %900 = vmatmul.mubr.bf16.gmra.mrb[8].mxu1 %v2333_v35 }
  0x33   :  { %556 = vmatprep.mubr.bf16.mxu0 %v2395_v1  ;;  %909 = vmatprep.mubr.bf16.mxu1 %v2395_v1 }
  0x3a   :  { %557 = vmatmul.mubr.bf16.gmra.mrb[12].mxu0 %v2334_v36  ;;  %910 = vmatmul.mubr.bf16.gmra.mrb[12].mxu1 %v2334_v36 }
  0x3b   :  { %566 = vmatprep.mubr.bf16.mxu0 %v2395_v1  ;;  %919 = vmatprep.mubr.bf16.mxu1 %v2395_v1 }
  0x42   :  { %567 = vmatmul.mubr.bf16.gmra.mrb[16].mxu0 %v2335_v37  ;;  %920 = vmatmul.mubr.bf16.gmra.mrb[16].mxu1 %v2335_v37 }
  0x43   :  { %576 = vmatprep.mubr.bf16.mxu0 %v2395_v1  ;;  %929 = vmatprep.mubr.bf16.mxu1 %v2395_v1 }
  0x4a   :  { %577 = vmatmul.mubr.bf16.gmra.mrb[20].mxu0 %v2336_v38  ;;  %930 = vmatmul.mubr.bf16.gmra.mrb[20].mxu1 %v2336_v38  ;;  %v2689_v38 = vsub.s32 %v1596_v32, %v123_v60 }
  0x4b   :  { %586 = vmatprep.mubr.bf16.mxu0 %v2395_v1  ;;  %939 = vmatprep.mubr.bf16.mxu1 %v2395_v1 }
  0x52   :  { %587 = vmatmul.mubr.bf16.gmra.mrb[24].mxu0 %v2337_v39  ;;  %940 = vmatmul.mubr.bf16.gmra.mrb[24].mxu1 %v2337_v39 }
  0x53   :  { %596 = vmatprep.mubr.bf16.mxu0 %v2395_v1  ;;  %949 = vmatprep.mubr.bf16.mxu1 %v2395_v1 }
  0x5a   :  { %597 = vmatmul.mubr.bf16.gmra.mrb[28].mxu0 %v2338_v40  ;;  %950 = vmatmul.mubr.bf16.gmra.mrb[28].mxu1 %v2338_v40 }
  0x5b   :  { %606 = vmatprep.mubr.bf16.mxu0 %v2395_v1  ;;  %959 = vmatprep.mubr.bf16.mxu1 %v2395_v1 }
  0x62   :  { %607 = vmatmul.mubr.bf16.gmra.mrb[32].mxu0 %v2339_v41  ;;  %960 = vmatmul.mubr.bf16.gmra.mrb[32].mxu1 %v2339_v41 }
  0x63   :  { %616 = vmatprep.mubr.bf16.mxu0 %v2395_v1  ;;  %969 = vmatprep.mubr.bf16.mxu1 %v2395_v1 }
  0x6a   :  { %617 = vmatmul.mubr.bf16.gmra.mrb[36].mxu0 %v2340_v42  ;;  %970 = vmatmul.mubr.bf16.gmra.mrb[36].mxu1 %v2340_v42 }
  0x6b   :  { %626 = vmatprep.mubr.bf16.mxu0 %v2395_v1  ;;  %979 = vmatprep.mubr.bf16.mxu1 %v2395_v1 }
  0x72   :  { %627 = vmatmul.mubr.bf16.gmra.mrb[40].mxu0 %v2341_v43  ;;  %980 = vmatmul.mubr.bf16.gmra.mrb[40].mxu1 %v2341_v43  ;;  %v2694_v43 = vld.sshfl [vmem:[%s3084_s3] sm:$0x33 pattern:$0x75316420] }
  0x73   :  { %636 = vmatprep.mubr.bf16.mxu0 %v2395_v1  ;;  %989 = vmatprep.mubr.bf16.mxu1 %v2395_v1 }
  0x7a   :  { %637 = vmatmul.mubr.bf16.gmra.mrb[44].mxu0 %v2342_v44  ;;  %990 = vmatmul.mubr.bf16.gmra.mrb[44].mxu1 %v2342_v44 }
  0x7b   :  { %646 = vmatprep.mubr.bf16.mxu0 %v2395_v1  ;;  %999 = vmatprep.mubr.bf16.mxu1 %v2395_v1 }
  0x82   :  { %647 = vmatmul.mubr.bf16.gmra.mrb[48].mxu0 %v2343_v45  ;;  %1000 = vmatmul.mubr.bf16.gmra.mrb[48].mxu1 %v2343_v45 }
  0x83   :  { %656 = vmatprep.mubr.bf16.mxu0 %v2395_v1  ;;  %1009 = vmatprep.mubr.bf16.mxu1 %v2395_v1 }
  0x8a   :  { %657 = vmatmul.mubr.bf16.gmra.mrb[52].mxu0 %v2344_v46  ;;  %1010 = vmatmul.mubr.bf16.gmra.mrb[52].mxu1 %v2344_v46  ;;  %v2359_v46 = vld [vmem:[%s3082_s0 + $0xe0] sm:$0xff]  }
  0x8b   :  { %666 = vmatprep.mubr.bf16.mxu0 %v2395_v1  ;;  %1019 = vmatprep.mubr.bf16.mxu1 %v2395_v1 }
  0x92   :  { %667 = vmatmul.mubr.bf16.gmra.mrb[56].mxu0 %v2345_v47  ;;  %1020 = vmatmul.mubr.bf16.gmra.mrb[56].mxu1 %v2345_v47 }
  0x93   :  { %676 = vmatprep.mubr.bf16.mxu0 %v2395_v1  ;;  %1029 = vmatprep.mubr.bf16.mxu1 %v2395_v1 }
  0x9a   :  { %677 = vmatmul.mubr.bf16.gmra.mrb[60].mxu0 %v2346_v48  ;;  %1030 = vmatmul.mubr.bf16.gmra.mrb[60].mxu1 %v2346_v48 }
  0x9b   :  { %686 = vmatprep.mubr.bf16.mxu0 %v2395_v1  ;;  %1039 = vmatprep.mubr.bf16.mxu1 %v2395_v1 }
  0xa2   :  { %687 = vmatmul.mubr.bf16.gmra.mrb[64].mxu0 %v2347_v49  ;;  %1040 = vmatmul.mubr.bf16.gmra.mrb[64].mxu1 %v2347_v49  ;;  %v2703_v49 = vrot.slane %v2694_v43, %v2689_v38 }
  0xa3   :  { %696 = vmatprep.mubr.bf16.mxu0 %v2395_v1  ;;  %1049 = vmatprep.mubr.bf16.mxu1 %v2395_v1 }
  0xaa   :  { %697 = vmatmul.mubr.bf16.gmra.mrb[68].mxu0 %v2348_v50  ;;  %1050 = vmatmul.mubr.bf16.gmra.mrb[68].mxu1 %v2348_v50 }
  0xab   :  { %706 = vmatprep.mubr.bf16.mxu0 %v2395_v1  ;;  %1059 = vmatprep.mubr.bf16.mxu1 %v2395_v1 }
  0xb2   :  { %707 = vmatmul.mubr.bf16.gmra.mrb[72].mxu0 %v2349_v51  ;;  %1060 = vmatmul.mubr.bf16.gmra.mrb[72].mxu1 %v2349_v51 }
  0xb3   :  { %716 = vmatprep.mubr.bf16.mxu0 %v2395_v1  ;;  %1069 = vmatprep.mubr.bf16.mxu1 %v2395_v1 }
  0xba   :  { %717 = vmatmul.mubr.bf16.gmra.mrb[76].mxu0 %v2350_v52  ;;  %1070 = vmatmul.mubr.bf16.gmra.mrb[76].mxu1 %v2350_v52 }
  0xbb   :  { %726 = vmatprep.mubr.bf16.mxu0 %v2395_v1  ;;  %1079 = vmatprep.mubr.bf16.mxu1 %v2395_v1 }
  0xc2   :  { %727 = vmatmul.mubr.bf16.gmra.mrb[80].mxu0 %v2351_v53  ;;  %1080 = vmatmul.mubr.bf16.gmra.mrb[80].mxu1 %v2351_v53 }
  0xc3   :  { %736 = vmatprep.mubr.bf16.mxu0 %v2395_v1  ;;  %1089 = vmatprep.mubr.bf16.mxu1 %v2395_v1 }
  0xca   :  { %737 = vmatmul.mubr.bf16.gmra.mrb[84].mxu0 %v2352_v54  ;;  %1090 = vmatmul.mubr.bf16.gmra.mrb[84].mxu1 %v2352_v54 }
  0xcb   :  { %746 = vmatprep.mubr.bf16.mxu0 %v2395_v1  ;;  %1099 = vmatprep.mubr.bf16.mxu1 %v2395_v1 }
  0xd2   :  { %747 = vmatmul.mubr.bf16.gmra.mrb[88].mxu0 %v2353_v55  ;;  %1100 = vmatmul.mubr.bf16.gmra.mrb[88].mxu1 %v2353_v55 }
  0xd3   :  { %756 = vmatprep.mubr.bf16.mxu0 %v2395_v1  ;;  %1109 = vmatprep.mubr.bf16.mxu1 %v2395_v1 }
  0xda   :  { %757 = vmatmul.mubr.bf16.gmra.mrb[92].mxu0 %v2354_v56  ;;  %1110 = vmatmul.mubr.bf16.gmra.mrb[92].mxu1 %v2354_v56 }
  0xdb   :  { %766 = vmatprep.mubr.bf16.mxu0 %v2395_v1  ;;  %1119 = vmatprep.mubr.bf16.mxu1 %v2395_v1 }
  0xe2   :  { %767 = vmatmul.mubr.bf16.gmra.mrb[96].mxu0 %v2355_v57  ;;  %1120 = vmatmul.mubr.bf16.gmra.mrb[96].mxu1 %v2355_v57 }
  0xe3   :  { %776 = vmatprep.mubr.bf16.mxu0 %v2395_v1  ;;  %1129 = vmatprep.mubr.bf16.mxu1 %v2395_v1 }
  0xea   :  { %777 = vmatmul.mubr.bf16.gmra.mrb[100].mxu0 %v2356_v58  ;;  %1130 = vmatmul.mubr.bf16.gmra.mrb[100].mxu1 %v2356_v58 }
  0xeb   :  { %786 = vmatprep.mubr.bf16.mxu0 %v2395_v1  ;;  %1139 = vmatprep.mubr.bf16.mxu1 %v2395_v1 }
  0xf2   :  { %787 = vmatmul.mubr.bf16.gmra.mrb[104].mxu0 %v2357_v61  ;;  %1140 = vmatmul.mubr.bf16.gmra.mrb[104].mxu1 %v2357_v61 }
  0xf3   :  { %796 = vmatprep.mubr.bf16.mxu0 %v2395_v1  ;;  %1149 = vmatprep.mubr.bf16.mxu1 %v2395_v1 }
  0xf5   :  { %v528_v8 = vpop.f32.mrb[0].mxu0  ;;  %v881_v9 = vpop.f32.mrb[0].mxu1 }
  0xf6   :  { %v529_v10 = vadd.f32 %v528_v8, %v2666_v4  ;;  %v882_v11 = vadd.f32 %v881_v9, %v2668_v5  ;;  %v530_v12 = vpop.f32.mrb[1].mxu0  ;;  %v883_v13 = vpop.f32.mrb[1].mxu1 }
  0xf7   :  { %v531_v15 = vadd.f32 %v530_v12, %v2670_v6  ;;  %v884_v16 = vadd.f32 %v883_v13, %v2672_v7  ;;  %v532_v17 = vpop.f32.mrb[2].mxu0  ;;  %v885_v18 = vpop.f32.mrb[2].mxu1 }
  0xf8   :  { %v1202_v21 = vmax.f32 %v882_v11, 0.0  ;;  %v533_v22 = vadd.f32 %v532_v17, %v2666_v4  ;;  %v886_v23 = vadd.f32 %v885_v18, %v2668_v5  ;;  %v534_v24 = vpop.f32.mrb[3].mxu0  ;;  %v887_v25 = vpop.f32.mrb[3].mxu1  ;;  %v1200_v29 = vmax.f32 %v529_v10, 0.0 }
  0xf9   :  { %v1203_v26 = vmax.f32 %v884_v16, 0.0  ;;  %v535_v27 = vadd.f32 %v534_v24, %v2670_v6  ;;  %v888_v28 = vadd.f32 %v887_v25, %v2672_v7  ;;  %v1201_v33 = vmax.f32 %v531_v15, 0.0  ;;  %v2360_v15 = vld [vmem:[%s3082_s0 + $0xe8] sm:$0xff]  }
  0xfa   :  { %v1204_v30 = vmax.f32 %v533_v22, 0.0  ;;  %v1206_v31 = vmax.f32 %v886_v23, 0.0  ;;  %797 = vmatmul.mubr.bf16.gmra.mrb[108].mxu0 %v2358_v14  ;;  %1150 = vmatmul.mubr.bf16.gmra.mrb[108].mxu1 %v2358_v14 }
  0xfb   :  { %v1205_v34 = vmax.f32 %v535_v27, 0.0  ;;  %v1207_v35 = vmax.f32 %v888_v28, 0.0  ;;  %806 = vmatprep.mubr.bf16.mxu0 %v2395_v1  ;;  %1159 = vmatprep.mubr.bf16.mxu1 %v2395_v1 }
  0xfc   :  { %v1457_v36 = vpack.c.bf16 %v1204_v30, %v1200_v29  ;;  %v1459_v37 = vpack.c.bf16 %v1206_v31, %v1202_v21 }
  0xfd   :  { %v1458_v39 = vpack.c.bf16 %v1205_v34, %v1201_v33  ;;  %v1460_v40 = vpack.c.bf16 %v1207_v35, %v1203_v26  ;;  %v538_v41 = vpop.f32.mrb[4].mxu0  ;;  %v891_v42 = vpop.f32.mrb[4].mxu1 }
  0xfe   :  { %v539_v44 = vadd.f32 %v538_v41, %v2666_v4  ;;  %v540_v45 = vpop.f32.mrb[5].mxu0  ;;  %v892_v47 = vadd.f32 %v891_v42, %v2668_v5  ;;  %v893_v48 = vpop.f32.mrb[5].mxu1 }
  0xff   :  { %1614 = vmatprep.subr.bf16.mxu0 %v1458_v39  ;;  %1696 = vmatprep.subr.bf16.mxu1 %v1460_v40  ;;  %v541_v50 = vadd.f32 %v540_v45, %v2670_v6  ;;  %v542_v51 = vpop.f32.mrb[6].mxu0  ;;  %v894_v52 = vadd.f32 %v893_v48, %v2672_v7  ;;  %v895_v53 = vpop.f32.mrb[6].mxu1 }
 0x100   :  { %1615 = vmatpush1.bf16.msra.mxu0 %v1457_v36  ;;  %1697 = vmatpush1.bf16.msra.mxu1 %v1459_v37  ;;  %v543_v54 = vadd.f32 %v542_v51, %v2666_v4  ;;  %v1210_v55 = vmax.f32 %v892_v47, 0.0  ;;  %v544_v56 = vpop.f32.mrb[7].mxu0  ;;  %v896_v57 = vadd.f32 %v895_v53, %v2668_v5  ;;  %v897_v58 = vpop.f32.mrb[7].mxu1  ;;  %v1208_v62 = vmax.f32 %v539_v44, 0.0 }
 0x101   :  { %v545_v59 = vadd.f32 %v544_v56, %v2670_v6  ;;  %v1211_v60 = vmax.f32 %v894_v52, 0.0  ;;  %v898_v61 = vadd.f32 %v897_v58, %v2672_v7  ;;  %v1209_v2 = vmax.f32 %v541_v50, 0.0 }
 0x102   :  { %807 = vmatmul.mubr.bf16.gmra.mrb[112].mxu0 %v2359_v46  ;;  %v1212_v63 = vmax.f32 %v543_v54, 0.0  ;;  %1160 = vmatmul.mubr.bf16.gmra.mrb[112].mxu1 %v2359_v46  ;;  %v1214_v0 = vmax.f32 %v896_v57, 0.0  ;;  %v2361_v46 = vld [vmem:[%s3082_s0 + $0xf0] sm:$0xff]  }
 0x103   :  { %v1213_v3 = vmax.f32 %v545_v59, 0.0  ;;  %v1215_v8 = vmax.f32 %v898_v61, 0.0  ;;  %816 = vmatprep.mubr.bf16.mxu0 %v2395_v1  ;;  %1169 = vmatprep.mubr.bf16.mxu1 %v2395_v1 }
 0x104   :  { %v1461_v9 = vpack.c.bf16 %v1212_v63, %v1208_v62  ;;  %v1463_v10 = vpack.c.bf16 %v1214_v0, %v1210_v55 }
 0x105   :  { %v1462_v11 = vpack.c.bf16 %v1213_v3, %v1209_v2  ;;  %v1464_v12 = vpack.c.bf16 %v1215_v8, %v1211_v60  ;;  %v548_v13 = vpop.f32.mrb[8].mxu0  ;;  %v901_v14 = vpop.f32.mrb[8].mxu1 }
 0x106   :  { %v549_v16 = vadd.f32 %v548_v13, %v2666_v4  ;;  %v550_v17 = vpop.f32.mrb[9].mxu0  ;;  %v902_v18 = vadd.f32 %v901_v14, %v2668_v5  ;;  %v903_v19 = vpop.f32.mrb[9].mxu1 }
 0x107   :  { %1616 = vmatprep.subr.bf16.mxu0 %v1462_v11  ;;  %1698 = vmatprep.subr.bf16.mxu1 %v1464_v12  ;;  %v551_v20 = vadd.f32 %v550_v17, %v2670_v6  ;;  %v552_v21 = vpop.f32.mrb[10].mxu0  ;;  %v904_v22 = vadd.f32 %v903_v19, %v2672_v7  ;;  %v905_v23 = vpop.f32.mrb[10].mxu1  ;;  %v1593_v11 = vcombine.high %v2694_v43, %v2694_v43 }
 0x108   :  { %1617 = vmatpush1.bf16.msra.mxu0 %v1461_v9  ;;  %1699 = vmatpush1.bf16.msra.mxu1 %v1463_v10  ;;  %v553_v24 = vadd.f32 %v552_v21, %v2666_v4  ;;  %v1218_v25 = vmax.f32 %v902_v18, 0.0  ;;  %v554_v26 = vpop.f32.mrb[11].mxu0  ;;  %v906_v27 = vadd.f32 %v905_v23, %v2668_v5  ;;  %v907_v28 = vpop.f32.mrb[11].mxu1  ;;  %v1216_v32 = vmax.f32 %v549_v16, 0.0  ;;  %v2362_v18 = vld [vmem:[%s3082_s0 + $0xf8] sm:$0xff]  }
 0x109   :  { %v555_v29 = vadd.f32 %v554_v26, %v2670_v6  ;;  %v1219_v30 = vmax.f32 %v904_v22, 0.0  ;;  %v908_v31 = vadd.f32 %v907_v28, %v2672_v7  ;;  %v1217_v35 = vmax.f32 %v551_v20, 0.0 }
 0x10a   :  { %817 = vmatmul.mubr.bf16.gmra.mrb[116].mxu0 %v2360_v15  ;;  %1170 = vmatmul.mubr.bf16.gmra.mrb[116].mxu1 %v2360_v15  ;;  %v1220_v33 = vmax.f32 %v553_v24, 0.0  ;;  %v1222_v34 = vmax.f32 %v906_v27, 0.0 }
 0x10b   :  { %826 = vmatprep.mubr.bf16.mxu0 %v2395_v1  ;;  %1179 = vmatprep.mubr.bf16.mxu1 %v2395_v1  ;;  %v1221_v36 = vmax.f32 %v555_v29, 0.0  ;;  %v1223_v37 = vmax.f32 %v908_v31, 0.0 }
 0x10c   :  { %v1465_v39 = vpack.c.bf16 %v1220_v33, %v1216_v32  ;;  %v1467_v40 = vpack.c.bf16 %v1222_v34, %v1218_v25  ;;  %v2749_v25 = vrot.slane %v1593_v11, %v2689_v38 }
 0x10d   :  { %v1466_v41 = vpack.c.bf16 %v1221_v36, %v1217_v35  ;;  %v1468_v42 = vpack.c.bf16 %v1223_v37, %v1219_v30  ;;  %v558_v44 = vpop.f32.mrb[12].mxu0  ;;  %v911_v45 = vpop.f32.mrb[12].mxu1 }
 0x10e   :  { %v559_v47 = vadd.f32 %v558_v44, %v2666_v4  ;;  %v560_v48 = vpop.f32.mrb[13].mxu0  ;;  %v912_v50 = vadd.f32 %v911_v45, %v2668_v5  ;;  %v913_v51 = vpop.f32.mrb[13].mxu1 }
 0x10f   :  { %1618 = vmatprep.subr.bf16.mxu0 %v1466_v41  ;;  %1700 = vmatprep.subr.bf16.mxu1 %v1468_v42  ;;  %v561_v52 = vadd.f32 %v560_v48, %v2670_v6  ;;  %v562_v53 = vpop.f32.mrb[14].mxu0  ;;  %v914_v54 = vadd.f32 %v913_v51, %v2672_v7  ;;  %v915_v55 = vpop.f32.mrb[14].mxu1 }
 0x110   :  { %1619 = vmatpush1.bf16.msra.mxu0 %v1465_v39  ;;  %1701 = vmatpush1.bf16.msra.mxu1 %v1467_v40  ;;  %v563_v56 = vadd.f32 %v562_v53, %v2666_v4  ;;  %v1226_v57 = vmax.f32 %v912_v50, 0.0  ;;  %v564_v58 = vpop.f32.mrb[15].mxu0  ;;  %v916_v59 = vadd.f32 %v915_v55, %v2668_v5  ;;  %v917_v60 = vpop.f32.mrb[15].mxu1  ;;  %v1224_v0 = vmax.f32 %v559_v47, 0.0 }
 0x111   :  { %v565_v61 = vadd.f32 %v564_v58, %v2670_v6  ;;  %v1227_v62 = vmax.f32 %v914_v54, 0.0  ;;  %v918_v63 = vadd.f32 %v917_v60, %v2672_v7  ;;  %v1225_v8 = vmax.f32 %v561_v52, 0.0 }
 0x112   :  { %827 = vmatmul.mubr.bf16.gmra.mrb[120].mxu0 %v2361_v46  ;;  %1180 = vmatmul.mubr.bf16.gmra.mrb[120].mxu1 %v2361_v46  ;;  %v1228_v2 = vmax.f32 %v563_v56, 0.0  ;;  %v1230_v3 = vmax.f32 %v916_v59, 0.0 }
 0x113   :  { %836 = vmatprep.mubr.bf16.mxu0 %v2395_v1  ;;  %1189 = vmatprep.mubr.bf16.mxu1 %v2395_v1  ;;  %v1229_v9 = vmax.f32 %v565_v61, 0.0  ;;  %v1231_v10 = vmax.f32 %v918_v63, 0.0 }
 0x114   :  { %v1469_v12 = vpack.c.bf16 %v1228_v2, %v1224_v0  ;;  %v1471_v13 = vpack.c.bf16 %v1230_v3, %v1226_v57 }
 0x115   :  { %v1470_v14 = vpack.c.bf16 %v1229_v9, %v1225_v8  ;;  %v1472_v15 = vpack.c.bf16 %v1231_v10, %v1227_v62  ;;  %v568_v16 = vpop.f32.mrb[16].mxu0  ;;  %v921_v17 = vpop.f32.mrb[16].mxu1 }
 0x116   :  { %v569_v19 = vadd.f32 %v568_v16, %v2666_v4  ;;  %v570_v20 = vpop.f32.mrb[17].mxu0  ;;  %v922_v1 = vadd.f32 %v921_v17, %v2668_v5  ;;  %v923_v21 = vpop.f32.mrb[17].mxu1 }
 0x117   :  { %1620 = vmatprep.subr.bf16.mxu0 %v1470_v14  ;;  %1702 = vmatprep.subr.bf16.mxu1 %v1472_v15  ;;  %v571_v43 = vadd.f32 %v570_v20, %v2670_v6  ;;  %v572_v22 = vpop.f32.mrb[18].mxu0  ;;  %v924_v23 = vadd.f32 %v923_v21, %v2672_v7  ;;  %v925_v24 = vpop.f32.mrb[18].mxu1 }
 0x118   :  { %1621 = vmatpush1.bf16.msra.mxu0 %v1469_v12  ;;  %1703 = vmatpush1.bf16.msra.mxu1 %v1471_v13  ;;  %v573_v26 = vadd.f32 %v572_v22, %v2666_v4  ;;  %v1234_v27 = vmax.f32 %v922_v1, 0.0  ;;  %v574_v28 = vpop.f32.mrb[19].mxu0  ;;  %v926_v29 = vadd.f32 %v925_v24, %v2668_v5  ;;  %v927_v30 = vpop.f32.mrb[19].mxu1  ;;  %v1232_v34 = vmax.f32 %v569_v19, 0.0 }
 0x119   :  { %v575_v31 = vadd.f32 %v574_v28, %v2670_v6  ;;  %v1235_v32 = vmax.f32 %v924_v23, 0.0  ;;  %v928_v33 = vadd.f32 %v927_v30, %v2672_v7  ;;  %v1233_v36 = vmax.f32 %v571_v43, 0.0 }
 0x11a   :  { %837 = vmatmul.mubr.bf16.gmra.mrb[124].mxu0 %v2362_v18  ;;  %1190 = vmatmul.mubr.bf16.gmra.mrb[124].mxu1 %v2362_v18  ;;  %v1236_v35 = vmax.f32 %v573_v26, 0.0  ;;  %v1238_v38 = vmax.f32 %v926_v29, 0.0 }
 0x11b   :  { %v1237_v37 = vmax.f32 %v575_v31, 0.0  ;;  %v1239_v39 = vmax.f32 %v928_v33, 0.0  ;;  %1646 = vmatprep.mubr.bf16.mxu0 %v2749_v25  ;;  %1728 = vmatprep.mubr.bf16.mxu1 %v2749_v25 }
 0x11c   :  { %v1473_v40 = vpack.c.bf16 %v1236_v35, %v1232_v34  ;;  %v1475_v41 = vpack.c.bf16 %v1238_v38, %v1234_v27 }
 0x11d   :  { %v1474_v42 = vpack.c.bf16 %v1237_v37, %v1233_v36  ;;  %v1476_v44 = vpack.c.bf16 %v1239_v39, %v1235_v32  ;;  %v578_v45 = vpop.f32.mrb[20].mxu0  ;;  %v931_v46 = vpop.f32.mrb[20].mxu1 }
 0x11e   :  { %v579_v47 = vadd.f32 %v578_v45, %v2666_v4  ;;  %v580_v48 = vpop.f32.mrb[21].mxu0  ;;  %v932_v50 = vadd.f32 %v931_v46, %v2668_v5  ;;  %v933_v51 = vpop.f32.mrb[21].mxu1 }
 0x11f   :  { %1622 = vmatprep.subr.bf16.mxu0 %v1474_v42  ;;  %1704 = vmatprep.subr.bf16.mxu1 %v1476_v44  ;;  %v581_v52 = vadd.f32 %v580_v48, %v2670_v6  ;;  %v582_v53 = vpop.f32.mrb[22].mxu0  ;;  %v934_v54 = vadd.f32 %v933_v51, %v2672_v7  ;;  %v935_v55 = vpop.f32.mrb[22].mxu1 }
 0x120   :  { %1623 = vmatpush1.bf16.msra.mxu0 %v1473_v40  ;;  %1705 = vmatpush1.bf16.msra.mxu1 %v1475_v41  ;;  %v583_v56 = vadd.f32 %v582_v53, %v2666_v4  ;;  %v1242_v57 = vmax.f32 %v932_v50, 0.0  ;;  %v584_v58 = vpop.f32.mrb[23].mxu0  ;;  %v936_v59 = vadd.f32 %v935_v55, %v2668_v5  ;;  %v937_v60 = vpop.f32.mrb[23].mxu1  ;;  %v1240_v0 = vmax.f32 %v579_v47, 0.0 }
 0x121   :  { %v585_v61 = vadd.f32 %v584_v58, %v2670_v6  ;;  %v1243_v62 = vmax.f32 %v934_v54, 0.0  ;;  %v938_v63 = vadd.f32 %v937_v60, %v2672_v7  ;;  %v1241_v8 = vmax.f32 %v581_v52, 0.0 }
 0x122   :  { %v1244_v2 = vmax.f32 %v583_v56, 0.0  ;;  %v1246_v3 = vmax.f32 %v936_v59, 0.0 }
 0x123   :  { %v1245_v9 = vmax.f32 %v585_v61, 0.0  ;;  %v1247_v10 = vmax.f32 %v938_v63, 0.0 }
 0x124   :  { %v1477_v11 = vpack.c.bf16 %v1244_v2, %v1240_v0  ;;  %v1479_v12 = vpack.c.bf16 %v1246_v3, %v1242_v57 }
 0x125   :  { %v1478_v13 = vpack.c.bf16 %v1245_v9, %v1241_v8  ;;  %v1480_v14 = vpack.c.bf16 %v1247_v10, %v1243_v62  ;;  %v588_v15 = vpop.f32.mrb[24].mxu0  ;;  %v941_v16 = vpop.f32.mrb[24].mxu1 }
 0x126   :  { %v589_v17 = vadd.f32 %v588_v15, %v2666_v4  ;;  %v590_v18 = vpop.f32.mrb[25].mxu0  ;;  %v942_v19 = vadd.f32 %v941_v16, %v2668_v5  ;;  %v943_v20 = vpop.f32.mrb[25].mxu1 }
 0x127   :  { %1624 = vmatprep.subr.bf16.mxu0 %v1478_v13  ;;  %1706 = vmatprep.subr.bf16.mxu1 %v1480_v14  ;;  %v591_v1 = vadd.f32 %v590_v18, %v2670_v6  ;;  %v592_v21 = vpop.f32.mrb[26].mxu0  ;;  %v944_v43 = vadd.f32 %v943_v20, %v2672_v7  ;;  %v945_v22 = vpop.f32.mrb[26].mxu1 }
 0x128   :  { %1625 = vmatpush1.bf16.msra.mxu0 %v1477_v11  ;;  %1707 = vmatpush1.bf16.msra.mxu1 %v1479_v12  ;;  %v593_v23 = vadd.f32 %v592_v21, %v2666_v4  ;;  %v1250_v24 = vmax.f32 %v942_v19, 0.0  ;;  %v594_v26 = vpop.f32.mrb[27].mxu0  ;;  %v946_v27 = vadd.f32 %v945_v22, %v2668_v5  ;;  %v947_v28 = vpop.f32.mrb[27].mxu1  ;;  %v1248_v32 = vmax.f32 %v589_v17, 0.0 }
 0x129   :  { %v595_v29 = vadd.f32 %v594_v26, %v2670_v6  ;;  %v1251_v30 = vmax.f32 %v944_v43, 0.0  ;;  %v948_v31 = vadd.f32 %v947_v28, %v2672_v7  ;;  %v1249_v35 = vmax.f32 %v591_v1, 0.0 }
 0x12a   :  { %v1252_v33 = vmax.f32 %v593_v23, 0.0  ;;  %v1254_v34 = vmax.f32 %v946_v27, 0.0 }
 0x12b   :  { %v1253_v38 = vmax.f32 %v595_v29, 0.0  ;;  %v1255_v36 = vmax.f32 %v948_v31, 0.0 }
 0x12c   :  { %v1481_v37 = vpack.c.bf16 %v1252_v33, %v1248_v32  ;;  %v1483_v39 = vpack.c.bf16 %v1254_v34, %v1250_v24 }
 0x12d   :  { %v1482_v40 = vpack.c.bf16 %v1253_v38, %v1249_v35  ;;  %v1484_v41 = vpack.c.bf16 %v1255_v36, %v1251_v30  ;;  %v598_v42 = vpop.f32.mrb[28].mxu0  ;;  %v951_v44 = vpop.f32.mrb[28].mxu1 }
 0x12e   :  { %v599_v45 = vadd.f32 %v598_v42, %v2666_v4  ;;  %v600_v46 = vpop.f32.mrb[29].mxu0  ;;  %v952_v47 = vadd.f32 %v951_v44, %v2668_v5  ;;  %v953_v48 = vpop.f32.mrb[29].mxu1 }
 0x12f   :  { %1626 = vmatprep.subr.bf16.mxu0 %v1482_v40  ;;  %1708 = vmatprep.subr.bf16.mxu1 %v1484_v41  ;;  %v601_v50 = vadd.f32 %v600_v46, %v2670_v6  ;;  %v602_v51 = vpop.f32.mrb[30].mxu0  ;;  %v954_v52 = vadd.f32 %v953_v48, %v2672_v7  ;;  %v955_v53 = vpop.f32.mrb[30].mxu1 }
 0x130   :  { %1627 = vmatpush1.bf16.msra.mxu0 %v1481_v37  ;;  %1709 = vmatpush1.bf16.msra.mxu1 %v1483_v39  ;;  %v603_v54 = vadd.f32 %v602_v51, %v2666_v4  ;;  %v1258_v55 = vmax.f32 %v952_v47, 0.0  ;;  %v604_v56 = vpop.f32.mrb[31].mxu0  ;;  %v956_v57 = vadd.f32 %v955_v53, %v2668_v5  ;;  %v957_v58 = vpop.f32.mrb[31].mxu1  ;;  %v1256_v62 = vmax.f32 %v599_v45, 0.0 }
 0x131   :  { %v605_v59 = vadd.f32 %v604_v56, %v2670_v6  ;;  %v1259_v60 = vmax.f32 %v954_v52, 0.0  ;;  %v958_v61 = vadd.f32 %v957_v58, %v2672_v7  ;;  %v1257_v2 = vmax.f32 %v601_v50, 0.0 }
 0x132   :  { %v1260_v63 = vmax.f32 %v603_v54, 0.0  ;;  %v1262_v0 = vmax.f32 %v956_v57, 0.0 }
 0x133   :  { %v1261_v3 = vmax.f32 %v605_v59, 0.0  ;;  %v1263_v8 = vmax.f32 %v958_v61, 0.0 }
 0x134   :  { %v1485_v9 = vpack.c.bf16 %v1260_v63, %v1256_v62  ;;  %v1487_v10 = vpack.c.bf16 %v1262_v0, %v1258_v55 }
 0x135   :  { %v1486_v11 = vpack.c.bf16 %v1261_v3, %v1257_v2  ;;  %v1488_v12 = vpack.c.bf16 %v1263_v8, %v1259_v60  ;;  %v608_v13 = vpop.f32.mrb[32].mxu0  ;;  %v961_v14 = vpop.f32.mrb[32].mxu1 }
 0x136   :  { %v609_v15 = vadd.f32 %v608_v13, %v2666_v4  ;;  %v610_v16 = vpop.f32.mrb[33].mxu0  ;;  %v962_v17 = vadd.f32 %v961_v14, %v2668_v5  ;;  %v963_v18 = vpop.f32.mrb[33].mxu1 }
 0x137   :  { %1628 = vmatprep.subr.bf16.mxu0 %v1486_v11  ;;  %1710 = vmatprep.subr.bf16.mxu1 %v1488_v12  ;;  %v611_v19 = vadd.f32 %v610_v16, %v2670_v6  ;;  %v612_v20 = vpop.f32.mrb[34].mxu0  ;;  %v964_v1 = vadd.f32 %v963_v18, %v2672_v7  ;;  %v965_v21 = vpop.f32.mrb[34].mxu1 }
 0x138   :  { %1629 = vmatpush1.bf16.msra.mxu0 %v1485_v9  ;;  %1711 = vmatpush1.bf16.msra.mxu1 %v1487_v10  ;;  %v613_v43 = vadd.f32 %v612_v20, %v2666_v4  ;;  %v1266_v22 = vmax.f32 %v962_v17, 0.0  ;;  %v614_v23 = vpop.f32.mrb[35].mxu0  ;;  %v966_v24 = vadd.f32 %v965_v21, %v2668_v5  ;;  %v967_v26 = vpop.f32.mrb[35].mxu1  ;;  %v1264_v30 = vmax.f32 %v609_v15, 0.0 }
 0x139   :  { %v615_v27 = vadd.f32 %v614_v23, %v2670_v6  ;;  %v1267_v28 = vmax.f32 %v964_v1, 0.0  ;;  %v968_v29 = vadd.f32 %v967_v26, %v2672_v7  ;;  %v1265_v33 = vmax.f32 %v611_v19, 0.0 }
 0x13a   :  { %v1268_v31 = vmax.f32 %v613_v43, 0.0  ;;  %v1270_v32 = vmax.f32 %v966_v24, 0.0 }
 0x13b   :  { %v1269_v34 = vmax.f32 %v615_v27, 0.0  ;;  %v1271_v35 = vmax.f32 %v968_v29, 0.0 }
 0x13c   :  { %v1489_v38 = vpack.c.bf16 %v1268_v31, %v1264_v30  ;;  %v1491_v36 = vpack.c.bf16 %v1270_v32, %v1266_v22 }
 0x13d   :  { %v1490_v37 = vpack.c.bf16 %v1269_v34, %v1265_v33  ;;  %v1492_v39 = vpack.c.bf16 %v1271_v35, %v1267_v28  ;;  %v618_v40 = vpop.f32.mrb[36].mxu0  ;;  %v971_v41 = vpop.f32.mrb[36].mxu1 }
 0x13e   :  { %v619_v42 = vadd.f32 %v618_v40, %v2666_v4  ;;  %v620_v44 = vpop.f32.mrb[37].mxu0  ;;  %v972_v45 = vadd.f32 %v971_v41, %v2668_v5  ;;  %v973_v46 = vpop.f32.mrb[37].mxu1 }
 0x13f   :  { %1630 = vmatprep.subr.bf16.mxu0 %v1490_v37  ;;  %1712 = vmatprep.subr.bf16.mxu1 %v1492_v39  ;;  %v621_v47 = vadd.f32 %v620_v44, %v2670_v6  ;;  %v622_v48 = vpop.f32.mrb[38].mxu0  ;;  %v974_v50 = vadd.f32 %v973_v46, %v2672_v7  ;;  %v975_v51 = vpop.f32.mrb[38].mxu1 }
 0x140   :  { %1631 = vmatpush1.bf16.msra.mxu0 %v1489_v38  ;;  %1713 = vmatpush1.bf16.msra.mxu1 %v1491_v36  ;;  %v623_v52 = vadd.f32 %v622_v48, %v2666_v4  ;;  %v1274_v53 = vmax.f32 %v972_v45, 0.0  ;;  %v624_v54 = vpop.f32.mrb[39].mxu0  ;;  %v976_v55 = vadd.f32 %v975_v51, %v2668_v5  ;;  %v977_v56 = vpop.f32.mrb[39].mxu1  ;;  %v1272_v60 = vmax.f32 %v619_v42, 0.0 }
 0x141   :  { %v625_v57 = vadd.f32 %v624_v54, %v2670_v6  ;;  %v1275_v58 = vmax.f32 %v974_v50, 0.0  ;;  %v978_v59 = vadd.f32 %v977_v56, %v2672_v7  ;;  %v1273_v63 = vmax.f32 %v621_v47, 0.0 }
 0x142   :  { %v1276_v61 = vmax.f32 %v623_v52, 0.0  ;;  %v1278_v62 = vmax.f32 %v976_v55, 0.0 }
 0x143   :  { %v1277_v0 = vmax.f32 %v625_v57, 0.0  ;;  %v1279_v2 = vmax.f32 %v978_v59, 0.0 }
 0x144   :  { %v1493_v3 = vpack.c.bf16 %v1276_v61, %v1272_v60  ;;  %v1495_v8 = vpack.c.bf16 %v1278_v62, %v1274_v53 }
 0x145   :  { %v1494_v9 = vpack.c.bf16 %v1277_v0, %v1273_v63  ;;  %v1496_v10 = vpack.c.bf16 %v1279_v2, %v1275_v58  ;;  %v628_v11 = vpop.f32.mrb[40].mxu0  ;;  %v981_v12 = vpop.f32.mrb[40].mxu1 }
 0x146   :  { %v629_v13 = vadd.f32 %v628_v11, %v2666_v4  ;;  %v630_v14 = vpop.f32.mrb[41].mxu0  ;;  %v982_v15 = vadd.f32 %v981_v12, %v2668_v5  ;;  %v983_v16 = vpop.f32.mrb[41].mxu1 }
 0x147   :  { %v631_v17 = vadd.f32 %v630_v14, %v2670_v6  ;;  %v632_v18 = vpop.f32.mrb[42].mxu0  ;;  %1632 = vmatprep.subr.bf16.mxu0 %v1494_v9  ;;  %v984_v19 = vadd.f32 %v983_v16, %v2672_v7  ;;  %v985_v20 = vpop.f32.mrb[42].mxu1  ;;  %1714 = vmatprep.subr.bf16.mxu1 %v1496_v10 }
 0x148   :  { %v633_v1 = vadd.f32 %v632_v18, %v2666_v4  ;;  %v1282_v21 = vmax.f32 %v982_v15, 0.0  ;;  %v634_v43 = vpop.f32.mrb[43].mxu0  ;;  %1633 = vmatpush1.bf16.msra.mxu0 %v1493_v3  ;;  %v986_v22 = vadd.f32 %v985_v20, %v2668_v5  ;;  %v987_v23 = vpop.f32.mrb[43].mxu1  ;;  %1715 = vmatpush1.bf16.msra.mxu1 %v1495_v8  ;;  %v1280_v28 = vmax.f32 %v629_v13, 0.0 }
 0x149   :  { %v635_v24 = vadd.f32 %v634_v43, %v2670_v6  ;;  %v1283_v26 = vmax.f32 %v984_v19, 0.0  ;;  %v988_v27 = vadd.f32 %v987_v23, %v2672_v7  ;;  %v1281_v31 = vmax.f32 %v631_v17, 0.0 }
 0x14a   :  { %v1284_v29 = vmax.f32 %v633_v1, 0.0  ;;  %v1286_v30 = vmax.f32 %v986_v22, 0.0 }
 0x14b   :  { %v1285_v32 = vmax.f32 %v635_v24, 0.0  ;;  %v1287_v33 = vmax.f32 %v988_v27, 0.0 }
 0x14c   :  { %v1497_v34 = vpack.c.bf16 %v1284_v29, %v1280_v28  ;;  %v1499_v35 = vpack.c.bf16 %v1286_v30, %v1282_v21 }
 0x14d   :  { %v1498_v38 = vpack.c.bf16 %v1285_v32, %v1281_v31  ;;  %v1500_v36 = vpack.c.bf16 %v1287_v33, %v1283_v26  ;;  %v638_v37 = vpop.f32.mrb[44].mxu0  ;;  %v991_v39 = vpop.f32.mrb[44].mxu1 }
 0x14e   :  { %v639_v40 = vadd.f32 %v638_v37, %v2666_v4  ;;  %v640_v41 = vpop.f32.mrb[45].mxu0  ;;  %v992_v42 = vadd.f32 %v991_v39, %v2668_v5  ;;  %v993_v44 = vpop.f32.mrb[45].mxu1 }
 0x14f   :  { %v641_v45 = vadd.f32 %v640_v41, %v2670_v6  ;;  %v642_v46 = vpop.f32.mrb[46].mxu0  ;;  %1634 = vmatprep.subr.bf16.mxu0 %v1498_v38  ;;  %v994_v47 = vadd.f32 %v993_v44, %v2672_v7  ;;  %v995_v48 = vpop.f32.mrb[46].mxu1  ;;  %1716 = vmatprep.subr.bf16.mxu1 %v1500_v36 }
 0x150   :  { %v643_v50 = vadd.f32 %v642_v46, %v2666_v4  ;;  %v1290_v51 = vmax.f32 %v992_v42, 0.0  ;;  %v644_v52 = vpop.f32.mrb[47].mxu0  ;;  %1635 = vmatpush1.bf16.msra.mxu0 %v1497_v34  ;;  %v996_v53 = vadd.f32 %v995_v48, %v2668_v5  ;;  %v997_v54 = vpop.f32.mrb[47].mxu1  ;;  %1717 = vmatpush1.bf16.msra.mxu1 %v1499_v35  ;;  %v1288_v58 = vmax.f32 %v639_v40, 0.0 }
 0x151   :  { %v645_v55 = vadd.f32 %v644_v52, %v2670_v6  ;;  %v1291_v56 = vmax.f32 %v994_v47, 0.0  ;;  %v998_v57 = vadd.f32 %v997_v54, %v2672_v7  ;;  %v1289_v61 = vmax.f32 %v641_v45, 0.0 }
 0x152   :  { %v1292_v59 = vmax.f32 %v643_v50, 0.0  ;;  %v1294_v60 = vmax.f32 %v996_v53, 0.0 }
 0x153   :  { %v1293_v62 = vmax.f32 %v645_v55, 0.0  ;;  %v1295_v63 = vmax.f32 %v998_v57, 0.0 }
 0x154   :  { %v1501_v0 = vpack.c.bf16 %v1292_v59, %v1288_v58  ;;  %v1503_v2 = vpack.c.bf16 %v1294_v60, %v1290_v51 }
 0x155   :  { %v1502_v3 = vpack.c.bf16 %v1293_v62, %v1289_v61  ;;  %v1504_v8 = vpack.c.bf16 %v1295_v63, %v1291_v56  ;;  %v648_v9 = vpop.f32.mrb[48].mxu0  ;;  %v1001_v10 = vpop.f32.mrb[48].mxu1 }
 0x156   :  { %v649_v11 = vadd.f32 %v648_v9, %v2666_v4  ;;  %v650_v12 = vpop.f32.mrb[49].mxu0  ;;  %v1002_v13 = vadd.f32 %v1001_v10, %v2668_v5  ;;  %v1003_v14 = vpop.f32.mrb[49].mxu1 }
 0x157   :  { %v651_v15 = vadd.f32 %v650_v12, %v2670_v6  ;;  %v652_v16 = vpop.f32.mrb[50].mxu0  ;;  %1636 = vmatprep.subr.bf16.mxu0 %v1502_v3  ;;  %v1004_v17 = vadd.f32 %v1003_v14, %v2672_v7  ;;  %v1005_v18 = vpop.f32.mrb[50].mxu1  ;;  %1718 = vmatprep.subr.bf16.mxu1 %v1504_v8 }
 0x158   :  { %v653_v19 = vadd.f32 %v652_v16, %v2666_v4  ;;  %v1298_v20 = vmax.f32 %v1002_v13, 0.0  ;;  %v654_v1 = vpop.f32.mrb[51].mxu0  ;;  %1637 = vmatpush1.bf16.msra.mxu0 %v1501_v0  ;;  %v1006_v21 = vadd.f32 %v1005_v18, %v2668_v5  ;;  %v1007_v43 = vpop.f32.mrb[51].mxu1  ;;  %1719 = vmatpush1.bf16.msra.mxu1 %v1503_v2  ;;  %v1296_v26 = vmax.f32 %v649_v11, 0.0 }
 0x159   :  { %v655_v22 = vadd.f32 %v654_v1, %v2670_v6  ;;  %v1299_v23 = vmax.f32 %v1004_v17, 0.0  ;;  %v1008_v24 = vadd.f32 %v1007_v43, %v2672_v7  ;;  %v1297_v29 = vmax.f32 %v651_v15, 0.0 }
 0x15a   :  { %v1300_v27 = vmax.f32 %v653_v19, 0.0  ;;  %v1302_v28 = vmax.f32 %v1006_v21, 0.0 }
 0x15b   :  { %v1301_v30 = vmax.f32 %v655_v22, 0.0  ;;  %v1303_v31 = vmax.f32 %v1008_v24, 0.0 }
 0x15c   :  { %v1505_v32 = vpack.c.bf16 %v1300_v27, %v1296_v26  ;;  %v1507_v33 = vpack.c.bf16 %v1302_v28, %v1298_v20 }
 0x15d   :  { %v1506_v34 = vpack.c.bf16 %v1301_v30, %v1297_v29  ;;  %v1508_v35 = vpack.c.bf16 %v1303_v31, %v1299_v23  ;;  %v658_v38 = vpop.f32.mrb[52].mxu0  ;;  %v1011_v36 = vpop.f32.mrb[52].mxu1 }
 0x15e   :  { %v659_v37 = vadd.f32 %v658_v38, %v2666_v4  ;;  %v660_v39 = vpop.f32.mrb[53].mxu0  ;;  %v1012_v40 = vadd.f32 %v1011_v36, %v2668_v5  ;;  %v1013_v41 = vpop.f32.mrb[53].mxu1 }
 0x15f   :  { %v661_v42 = vadd.f32 %v660_v39, %v2670_v6  ;;  %v662_v44 = vpop.f32.mrb[54].mxu0  ;;  %1638 = vmatprep.subr.bf16.mxu0 %v1506_v34  ;;  %v1014_v45 = vadd.f32 %v1013_v41, %v2672_v7  ;;  %v1015_v46 = vpop.f32.mrb[54].mxu1  ;;  %1720 = vmatprep.subr.bf16.mxu1 %v1508_v35 }
 0x160   :  { %v663_v47 = vadd.f32 %v662_v44, %v2666_v4  ;;  %v1306_v48 = vmax.f32 %v1012_v40, 0.0  ;;  %v664_v50 = vpop.f32.mrb[55].mxu0  ;;  %1639 = vmatpush1.bf16.msra.mxu0 %v1505_v32  ;;  %v1016_v51 = vadd.f32 %v1015_v46, %v2668_v5  ;;  %v1017_v52 = vpop.f32.mrb[55].mxu1  ;;  %1721 = vmatpush1.bf16.msra.mxu1 %v1507_v33  ;;  %v1304_v56 = vmax.f32 %v659_v37, 0.0 }
 0x161   :  { %v665_v53 = vadd.f32 %v664_v50, %v2670_v6  ;;  %v1307_v54 = vmax.f32 %v1014_v45, 0.0  ;;  %v1018_v55 = vadd.f32 %v1017_v52, %v2672_v7  ;;  %v1305_v59 = vmax.f32 %v661_v42, 0.0 }
 0x162   :  { %v1308_v57 = vmax.f32 %v663_v47, 0.0  ;;  %v1310_v58 = vmax.f32 %v1016_v51, 0.0 }
 0x163   :  { %v1309_v60 = vmax.f32 %v665_v53, 0.0  ;;  %v1311_v61 = vmax.f32 %v1018_v55, 0.0 }
 0x164   :  { %v1509_v62 = vpack.c.bf16 %v1308_v57, %v1304_v56  ;;  %v1511_v63 = vpack.c.bf16 %v1310_v58, %v1306_v48 }
 0x165   :  { %v1510_v0 = vpack.c.bf16 %v1309_v60, %v1305_v59  ;;  %v1512_v2 = vpack.c.bf16 %v1311_v61, %v1307_v54  ;;  %v668_v3 = vpop.f32.mrb[56].mxu0  ;;  %v1021_v8 = vpop.f32.mrb[56].mxu1 }
 0x166   :  { %v669_v9 = vadd.f32 %v668_v3, %v2666_v4  ;;  %v670_v10 = vpop.f32.mrb[57].mxu0  ;;  %v1022_v11 = vadd.f32 %v1021_v8, %v2668_v5  ;;  %v1023_v12 = vpop.f32.mrb[57].mxu1 }
 0x167   :  { %v671_v13 = vadd.f32 %v670_v10, %v2670_v6  ;;  %v672_v14 = vpop.f32.mrb[58].mxu0  ;;  %1640 = vmatprep.subr.bf16.mxu0 %v1510_v0  ;;  %v1024_v15 = vadd.f32 %v1023_v12, %v2672_v7  ;;  %v1025_v16 = vpop.f32.mrb[58].mxu1  ;;  %1722 = vmatprep.subr.bf16.mxu1 %v1512_v2 }
 0x168   :  { %v673_v17 = vadd.f32 %v672_v14, %v2666_v4  ;;  %v1314_v18 = vmax.f32 %v1022_v11, 0.0  ;;  %v674_v19 = vpop.f32.mrb[59].mxu0  ;;  %1641 = vmatpush1.bf16.msra.mxu0 %v1509_v62  ;;  %v1026_v20 = vadd.f32 %v1025_v16, %v2668_v5  ;;  %v1027_v1 = vpop.f32.mrb[59].mxu1  ;;  %1723 = vmatpush1.bf16.msra.mxu1 %v1511_v63  ;;  %v1312_v23 = vmax.f32 %v669_v9, 0.0 }
 0x169   :  { %v675_v21 = vadd.f32 %v674_v19, %v2670_v6  ;;  %v1315_v43 = vmax.f32 %v1024_v15, 0.0  ;;  %v1028_v22 = vadd.f32 %v1027_v1, %v2672_v7  ;;  %v1313_v27 = vmax.f32 %v671_v13, 0.0 }
 0x16a   :  { %v1316_v24 = vmax.f32 %v673_v17, 0.0  ;;  %v1318_v26 = vmax.f32 %v1026_v20, 0.0 }
 0x16b   :  { %v1317_v28 = vmax.f32 %v675_v21, 0.0  ;;  %v1319_v29 = vmax.f32 %v1028_v22, 0.0 }
 0x16c   :  { %v1513_v30 = vpack.c.bf16 %v1316_v24, %v1312_v23  ;;  %v1515_v31 = vpack.c.bf16 %v1318_v26, %v1314_v18  ;;  %v1609_v24 = vcombine.high %v2749_v25, %v2749_v25 }
 0x16d   :  { %v1514_v32 = vpack.c.bf16 %v1317_v28, %v1313_v27  ;;  %v1516_v33 = vpack.c.bf16 %v1319_v29, %v1315_v43  ;;  %v678_v34 = vpop.f32.mrb[60].mxu0  ;;  %v1031_v35 = vpop.f32.mrb[60].mxu1 }
 0x16e   :  { %v679_v38 = vadd.f32 %v678_v34, %v2666_v4  ;;  %v680_v36 = vpop.f32.mrb[61].mxu0  ;;  %v1032_v37 = vadd.f32 %v1031_v35, %v2668_v5  ;;  %v1033_v39 = vpop.f32.mrb[61].mxu1 }
 0x16f   :  { %v681_v40 = vadd.f32 %v680_v36, %v2670_v6  ;;  %v682_v41 = vpop.f32.mrb[62].mxu0  ;;  %1642 = vmatprep.subr.bf16.mxu0 %v1514_v32  ;;  %v1034_v42 = vadd.f32 %v1033_v39, %v2672_v7  ;;  %v1035_v44 = vpop.f32.mrb[62].mxu1  ;;  %1724 = vmatprep.subr.bf16.mxu1 %v1516_v33 }
 0x170   :  { %v683_v45 = vadd.f32 %v682_v41, %v2666_v4  ;;  %v1322_v46 = vmax.f32 %v1032_v37, 0.0  ;;  %v684_v47 = vpop.f32.mrb[63].mxu0  ;;  %1643 = vmatpush1.bf16.msra.mxu0 %v1513_v30  ;;  %v1036_v48 = vadd.f32 %v1035_v44, %v2668_v5  ;;  %v1037_v50 = vpop.f32.mrb[63].mxu1  ;;  %1725 = vmatpush1.bf16.msra.mxu1 %v1515_v31  ;;  %v1320_v54 = vmax.f32 %v679_v38, 0.0 }
 0x171   :  { %v685_v51 = vadd.f32 %v684_v47, %v2670_v6  ;;  %v1323_v52 = vmax.f32 %v1034_v42, 0.0  ;;  %v1038_v53 = vadd.f32 %v1037_v50, %v2672_v7  ;;  %v1321_v57 = vmax.f32 %v681_v40, 0.0 }
 0x172   :  { %v1324_v55 = vmax.f32 %v683_v45, 0.0  ;;  %v1326_v56 = vmax.f32 %v1036_v48, 0.0 }
 0x173   :  { %v1325_v58 = vmax.f32 %v685_v51, 0.0  ;;  %v1327_v59 = vmax.f32 %v1038_v53, 0.0 }
 0x174   :  { %v1517_v60 = vpack.c.bf16 %v1324_v55, %v1320_v54  ;;  %v1519_v61 = vpack.c.bf16 %v1326_v56, %v1322_v46 }
 0x175   :  { %v1518_v62 = vpack.c.bf16 %v1325_v58, %v1321_v57  ;;  %v688_v63 = vpop.f32.mrb[64].mxu0  ;;  %v1520_v0 = vpack.c.bf16 %v1327_v59, %v1323_v52  ;;  %v1041_v2 = vpop.f32.mrb[64].mxu1 }
 0x176   :  { %v689_v3 = vadd.f32 %v688_v63, %v2666_v4  ;;  %v690_v8 = vpop.f32.mrb[65].mxu0  ;;  %v1042_v9 = vadd.f32 %v1041_v2, %v2668_v5  ;;  %v1043_v10 = vpop.f32.mrb[65].mxu1 }
 0x177   :  { %v691_v11 = vadd.f32 %v690_v8, %v2670_v6  ;;  %v692_v12 = vpop.f32.mrb[66].mxu0  ;;  %v1044_v13 = vadd.f32 %v1043_v10, %v2672_v7  ;;  %v1045_v14 = vpop.f32.mrb[66].mxu1  ;;  %1644 = vmatprep.subr.bf16.mxu0 %v1518_v62  ;;  %1726 = vmatprep.subr.bf16.mxu1 %v1520_v0 }
 0x178   :  { %v693_v15 = vadd.f32 %v692_v12, %v2666_v4  ;;  %v1330_v16 = vmax.f32 %v1042_v9, 0.0  ;;  %v694_v17 = vpop.f32.mrb[67].mxu0  ;;  %v1046_v18 = vadd.f32 %v1045_v14, %v2668_v5  ;;  %v1047_v19 = vpop.f32.mrb[67].mxu1  ;;  %1645 = vmatpush1.bf16.msra.mxu0 %v1517_v60  ;;  %1727 = vmatpush1.bf16.msra.mxu1 %v1519_v61  ;;  %v1328_v43 = vmax.f32 %v689_v3, 0.0 }
 0x179   :  { %v695_v20 = vadd.f32 %v694_v17, %v2670_v6  ;;  %v1331_v1 = vmax.f32 %v1044_v13, 0.0  ;;  %v1048_v21 = vadd.f32 %v1047_v19, %v2672_v7  ;;  %v1329_v26 = vmax.f32 %v691_v11, 0.0 }
 0x17a   :  { %v1332_v22 = vmax.f32 %v693_v15, 0.0  ;;  %v1334_v23 = vmax.f32 %v1046_v18, 0.0 }
 0x17b   :  { %v1333_v27 = vmax.f32 %v695_v20, 0.0  ;;  %v1335_v28 = vmax.f32 %v1048_v21, 0.0  ;;  %1647 = vmatmul.mubr.bf16.vlgmr.msra.gmra.mrb[128].mxu0 %v2703_v49  ;;  %1729 = vmatmul.mubr.bf16.vlgmr.msra.gmra.mrb[128].mxu1 %v2703_v49 }
 0x17c   :  { %v1521_v29 = vpack.c.bf16 %v1332_v22, %v1328_v43  ;;  %v1523_v30 = vpack.c.bf16 %v1334_v23, %v1330_v16  ;;  %1687 = vmatprep.mubr.bf16.mxu0 %v1609_v24  ;;  %1769 = vmatprep.mubr.bf16.mxu1 %v1609_v24 }
 0x17d   :  { %v1522_v31 = vpack.c.bf16 %v1333_v27, %v1329_v26  ;;  %v698_v32 = vpop.f32.mrb[68].mxu0  ;;  %v1524_v33 = vpack.c.bf16 %v1335_v28, %v1331_v1  ;;  %v1051_v34 = vpop.f32.mrb[68].mxu1 }
 0x17e   :  { %v699_v35 = vadd.f32 %v698_v32, %v2666_v4  ;;  %v700_v38 = vpop.f32.mrb[69].mxu0  ;;  %v1052_v25 = vadd.f32 %v1051_v34, %v2668_v5  ;;  %v1053_v36 = vpop.f32.mrb[69].mxu1 }
 0x17f   :  { %v701_v37 = vadd.f32 %v700_v38, %v2670_v6  ;;  %v702_v39 = vpop.f32.mrb[70].mxu0  ;;  %v1054_v40 = vadd.f32 %v1053_v36, %v2672_v7  ;;  %v1055_v41 = vpop.f32.mrb[70].mxu1  ;;  %1655 = vmatprep.subr.bf16.mxu0 %v1522_v31  ;;  %1737 = vmatprep.subr.bf16.mxu1 %v1524_v33 }
 0x180   :  { %v703_v42 = vadd.f32 %v702_v39, %v2666_v4  ;;  %v1338_v44 = vmax.f32 %v1052_v25, 0.0  ;;  %v704_v45 = vpop.f32.mrb[71].mxu0  ;;  %v1056_v46 = vadd.f32 %v1055_v41, %v2668_v5  ;;  %v1057_v47 = vpop.f32.mrb[71].mxu1  ;;  %1656 = vmatpush1.bf16.msra.mxu0 %v1521_v29  ;;  %1738 = vmatpush1.bf16.msra.mxu1 %v1523_v30  ;;  %v1336_v48 = vmax.f32 %v699_v35, 0.0 }
 0x181   :  { %v705_v50 = vadd.f32 %v704_v45, %v2670_v6  ;;  %v1339_v51 = vmax.f32 %v1054_v40, 0.0  ;;  %v1058_v52 = vadd.f32 %v1057_v47, %v2672_v7  ;;  %v1337_v55 = vmax.f32 %v701_v37, 0.0 }
 0x182   :  { %v1340_v53 = vmax.f32 %v703_v42, 0.0  ;;  %v1342_v54 = vmax.f32 %v1056_v46, 0.0 }
 0x183   :  { %v1341_v56 = vmax.f32 %v705_v50, 0.0  ;;  %v1343_v57 = vmax.f32 %v1058_v52, 0.0 }
 0x184   :  { %v1525_v58 = vpack.c.bf16 %v1340_v53, %v1336_v48  ;;  %v1527_v59 = vpack.c.bf16 %v1342_v54, %v1338_v44 }
 0x185   :  { %v1526_v60 = vpack.c.bf16 %v1341_v56, %v1337_v55  ;;  %v708_v61 = vpop.f32.mrb[72].mxu0  ;;  %v1528_v62 = vpack.c.bf16 %v1343_v57, %v1339_v51  ;;  %v1061_v63 = vpop.f32.mrb[72].mxu1 }
 0x186   :  { %v709_v0 = vadd.f32 %v708_v61, %v2666_v4  ;;  %v710_v2 = vpop.f32.mrb[73].mxu0  ;;  %v1062_v3 = vadd.f32 %v1061_v63, %v2668_v5  ;;  %v1063_v8 = vpop.f32.mrb[73].mxu1 }
 0x187   :  { %v711_v9 = vadd.f32 %v710_v2, %v2670_v6  ;;  %v712_v10 = vpop.f32.mrb[74].mxu0  ;;  %v1064_v11 = vadd.f32 %v1063_v8, %v2672_v7  ;;  %v1065_v12 = vpop.f32.mrb[74].mxu1  ;;  %1657 = vmatprep.subr.bf16.mxu0 %v1526_v60  ;;  %1739 = vmatprep.subr.bf16.mxu1 %v1528_v62 }
 0x188   :  { %v713_v13 = vadd.f32 %v712_v10, %v2666_v4  ;;  %v1346_v14 = vmax.f32 %v1062_v3, 0.0  ;;  %v714_v15 = vpop.f32.mrb[75].mxu0  ;;  %v1066_v16 = vadd.f32 %v1065_v12, %v2668_v5  ;;  %v1067_v17 = vpop.f32.mrb[75].mxu1  ;;  %1658 = vmatpush1.bf16.msra.mxu0 %v1525_v58  ;;  %1740 = vmatpush1.bf16.msra.mxu1 %v1527_v59  ;;  %v1344_v18 = vmax.f32 %v709_v0, 0.0 }
 0x189   :  { %v715_v19 = vadd.f32 %v714_v15, %v2670_v6  ;;  %v1347_v20 = vmax.f32 %v1064_v11, 0.0  ;;  %v1068_v1 = vadd.f32 %v1067_v17, %v2672_v7  ;;  %v1345_v22 = vmax.f32 %v711_v9, 0.0 }
 0x18a   :  { %v1348_v21 = vmax.f32 %v713_v13, 0.0  ;;  %v1350_v43 = vmax.f32 %v1066_v16, 0.0 }
 0x18b   :  { %v1349_v23 = vmax.f32 %v715_v19, 0.0  ;;  %v1351_v24 = vmax.f32 %v1068_v1, 0.0 }
 0x18c   :  { %v1529_v26 = vpack.c.bf16 %v1348_v21, %v1344_v18  ;;  %v1531_v27 = vpack.c.bf16 %v1350_v43, %v1346_v14 }
 0x18d   :  { %v1530_v28 = vpack.c.bf16 %v1349_v23, %v1345_v22  ;;  %v718_v29 = vpop.f32.mrb[76].mxu0  ;;  %v1532_v30 = vpack.c.bf16 %v1351_v24, %v1347_v20  ;;  %v1071_v31 = vpop.f32.mrb[76].mxu1 }
 0x18e   :  { %v719_v32 = vadd.f32 %v718_v29, %v2666_v4  ;;  %v720_v33 = vpop.f32.mrb[77].mxu0  ;;  %v1072_v34 = vadd.f32 %v1071_v31, %v2668_v5  ;;  %v1073_v35 = vpop.f32.mrb[77].mxu1 }
 0x18f   :  { %v721_v38 = vadd.f32 %v720_v33, %v2670_v6  ;;  %v722_v25 = vpop.f32.mrb[78].mxu0  ;;  %v1074_v36 = vadd.f32 %v1073_v35, %v2672_v7  ;;  %v1075_v37 = vpop.f32.mrb[78].mxu1  ;;  %1659 = vmatprep.subr.bf16.mxu0 %v1530_v28  ;;  %1741 = vmatprep.subr.bf16.mxu1 %v1532_v30 }
 0x190   :  { %v723_v39 = vadd.f32 %v722_v25, %v2666_v4  ;;  %v1354_v40 = vmax.f32 %v1072_v34, 0.0  ;;  %v724_v41 = vpop.f32.mrb[79].mxu0  ;;  %v1076_v42 = vadd.f32 %v1075_v37, %v2668_v5  ;;  %v1077_v44 = vpop.f32.mrb[79].mxu1  ;;  %1660 = vmatpush1.bf16.msra.mxu0 %v1529_v26  ;;  %1742 = vmatpush1.bf16.msra.mxu1 %v1531_v27  ;;  %v1352_v48 = vmax.f32 %v719_v32, 0.0 }
 0x191   :  { %v725_v45 = vadd.f32 %v724_v41, %v2670_v6  ;;  %v1355_v46 = vmax.f32 %v1074_v36, 0.0  ;;  %v1078_v47 = vadd.f32 %v1077_v44, %v2672_v7  ;;  %v1353_v50 = vmax.f32 %v721_v38, 0.0 }
 0x192   :  { %v1356_v51 = vmax.f32 %v723_v39, 0.0  ;;  %v1358_v52 = vmax.f32 %v1076_v42, 0.0 }
 0x193   :  { %v1357_v53 = vmax.f32 %v725_v45, 0.0  ;;  %v1359_v54 = vmax.f32 %v1078_v47, 0.0 }
 0x194   :  { %v1533_v55 = vpack.c.bf16 %v1356_v51, %v1352_v48  ;;  %v1535_v56 = vpack.c.bf16 %v1358_v52, %v1354_v40 }
 0x195   :  { %v1534_v57 = vpack.c.bf16 %v1357_v53, %v1353_v50  ;;  %v728_v58 = vpop.f32.mrb[80].mxu0  ;;  %v1536_v59 = vpack.c.bf16 %v1359_v54, %v1355_v46  ;;  %v1081_v60 = vpop.f32.mrb[80].mxu1 }
 0x196   :  { %v729_v61 = vadd.f32 %v728_v58, %v2666_v4  ;;  %v730_v62 = vpop.f32.mrb[81].mxu0  ;;  %v1082_v63 = vadd.f32 %v1081_v60, %v2668_v5  ;;  %v1083_v0 = vpop.f32.mrb[81].mxu1 }
 0x197   :  { %v731_v2 = vadd.f32 %v730_v62, %v2670_v6  ;;  %v732_v3 = vpop.f32.mrb[82].mxu0  ;;  %v1084_v8 = vadd.f32 %v1083_v0, %v2672_v7  ;;  %v1085_v9 = vpop.f32.mrb[82].mxu1  ;;  %1661 = vmatprep.subr.bf16.mxu0 %v1534_v57  ;;  %1743 = vmatprep.subr.bf16.mxu1 %v1536_v59 }
 0x198   :  { %v733_v10 = vadd.f32 %v732_v3, %v2666_v4  ;;  %v1362_v11 = vmax.f32 %v1082_v63, 0.0  ;;  %v734_v12 = vpop.f32.mrb[83].mxu0  ;;  %v1086_v13 = vadd.f32 %v1085_v9, %v2668_v5  ;;  %v1087_v14 = vpop.f32.mrb[83].mxu1  ;;  %1662 = vmatpush1.bf16.msra.mxu0 %v1533_v55  ;;  %1744 = vmatpush1.bf16.msra.mxu1 %v1535_v56  ;;  %v1360_v15 = vmax.f32 %v729_v61, 0.0 }
 0x199   :  { %v735_v16 = vadd.f32 %v734_v12, %v2670_v6  ;;  %v1363_v17 = vmax.f32 %v1084_v8, 0.0  ;;  %v1088_v18 = vadd.f32 %v1087_v14, %v2672_v7  ;;  %v1361_v1 = vmax.f32 %v731_v2, 0.0 }
 0x19a   :  { %v1364_v19 = vmax.f32 %v733_v10, 0.0  ;;  %v1366_v20 = vmax.f32 %v1086_v13, 0.0 }
 0x19b   :  { %v1365_v21 = vmax.f32 %v735_v16, 0.0  ;;  %v1367_v43 = vmax.f32 %v1088_v18, 0.0 }
 0x19c   :  { %v1537_v22 = vpack.c.bf16 %v1364_v19, %v1360_v15  ;;  %v1539_v23 = vpack.c.bf16 %v1366_v20, %v1362_v11 }
 0x19d   :  { %v1538_v24 = vpack.c.bf16 %v1365_v21, %v1361_v1  ;;  %v738_v26 = vpop.f32.mrb[84].mxu0  ;;  %v1540_v27 = vpack.c.bf16 %v1367_v43, %v1363_v17  ;;  %v1091_v28 = vpop.f32.mrb[84].mxu1 }
 0x19e   :  { %v739_v29 = vadd.f32 %v738_v26, %v2666_v4  ;;  %v740_v30 = vpop.f32.mrb[85].mxu0  ;;  %v1092_v31 = vadd.f32 %v1091_v28, %v2668_v5  ;;  %v1093_v32 = vpop.f32.mrb[85].mxu1 }
 0x19f   :  { %v741_v33 = vadd.f32 %v740_v30, %v2670_v6  ;;  %v742_v34 = vpop.f32.mrb[86].mxu0  ;;  %v1094_v35 = vadd.f32 %v1093_v32, %v2672_v7  ;;  %v1095_v38 = vpop.f32.mrb[86].mxu1  ;;  %1663 = vmatprep.subr.bf16.mxu0 %v1538_v24  ;;  %1745 = vmatprep.subr.bf16.mxu1 %v1540_v27 }
 0x1a0   :  { %v743_v25 = vadd.f32 %v742_v34, %v2666_v4  ;;  %v1370_v36 = vmax.f32 %v1092_v31, 0.0  ;;  %v744_v37 = vpop.f32.mrb[87].mxu0  ;;  %v1096_v39 = vadd.f32 %v1095_v38, %v2668_v5  ;;  %v1097_v40 = vpop.f32.mrb[87].mxu1  ;;  %1664 = vmatpush1.bf16.msra.mxu0 %v1537_v22  ;;  %1746 = vmatpush1.bf16.msra.mxu1 %v1539_v23  ;;  %v1368_v41 = vmax.f32 %v739_v29, 0.0 }
 0x1a1   :  { %v745_v42 = vadd.f32 %v744_v37, %v2670_v6  ;;  %v1371_v44 = vmax.f32 %v1094_v35, 0.0  ;;  %v1098_v45 = vadd.f32 %v1097_v40, %v2672_v7  ;;  %v1369_v48 = vmax.f32 %v741_v33, 0.0 }
 0x1a2   :  { %v1372_v46 = vmax.f32 %v743_v25, 0.0  ;;  %v1374_v47 = vmax.f32 %v1096_v39, 0.0 }
 0x1a3   :  { %v1373_v50 = vmax.f32 %v745_v42, 0.0  ;;  %v1375_v51 = vmax.f32 %v1098_v45, 0.0 }
 0x1a4   :  { %v1541_v52 = vpack.c.bf16 %v1372_v46, %v1368_v41  ;;  %v1543_v53 = vpack.c.bf16 %v1374_v47, %v1370_v36 }
 0x1a5   :  { %v1542_v54 = vpack.c.bf16 %v1373_v50, %v1369_v48  ;;  %v748_v55 = vpop.f32.mrb[88].mxu0  ;;  %v1544_v56 = vpack.c.bf16 %v1375_v51, %v1371_v44  ;;  %v1101_v57 = vpop.f32.mrb[88].mxu1 }
 0x1a6   :  { %v749_v58 = vadd.f32 %v748_v55, %v2666_v4  ;;  %v750_v59 = vpop.f32.mrb[89].mxu0  ;;  %v1102_v60 = vadd.f32 %v1101_v57, %v2668_v5  ;;  %v1103_v61 = vpop.f32.mrb[89].mxu1 }
 0x1a7   :  { %v751_v62 = vadd.f32 %v750_v59, %v2670_v6  ;;  %v752_v63 = vpop.f32.mrb[90].mxu0  ;;  %v1104_v0 = vadd.f32 %v1103_v61, %v2672_v7  ;;  %v1105_v2 = vpop.f32.mrb[90].mxu1  ;;  %1665 = vmatprep.subr.bf16.mxu0 %v1542_v54  ;;  %1747 = vmatprep.subr.bf16.mxu1 %v1544_v56 }
 0x1a8   :  { %v753_v3 = vadd.f32 %v752_v63, %v2666_v4  ;;  %v1378_v8 = vmax.f32 %v1102_v60, 0.0  ;;  %v754_v9 = vpop.f32.mrb[91].mxu0  ;;  %v1106_v10 = vadd.f32 %v1105_v2, %v2668_v5  ;;  %v1107_v11 = vpop.f32.mrb[91].mxu1  ;;  %1666 = vmatpush1.bf16.msra.mxu0 %v1541_v52  ;;  %1748 = vmatpush1.bf16.msra.mxu1 %v1543_v53  ;;  %v1376_v15 = vmax.f32 %v749_v58, 0.0 }
 0x1a9   :  { %v755_v12 = vadd.f32 %v754_v9, %v2670_v6  ;;  %v1379_v13 = vmax.f32 %v1104_v0, 0.0  ;;  %v1108_v14 = vadd.f32 %v1107_v11, %v2672_v7  ;;  %v1377_v18 = vmax.f32 %v751_v62, 0.0 }
 0x1aa   :  { %v1380_v16 = vmax.f32 %v753_v3, 0.0  ;;  %v1382_v17 = vmax.f32 %v1106_v10, 0.0 }
 0x1ab   :  { %v1381_v19 = vmax.f32 %v755_v12, 0.0  ;;  %v1383_v20 = vmax.f32 %v1108_v14, 0.0 }
 0x1ac   :  { %v1545_v1 = vpack.c.bf16 %v1380_v16, %v1376_v15  ;;  %v1547_v21 = vpack.c.bf16 %v1382_v17, %v1378_v8 }
 0x1ad   :  { %v1546_v43 = vpack.c.bf16 %v1381_v19, %v1377_v18  ;;  %v758_v22 = vpop.f32.mrb[92].mxu0  ;;  %v1548_v23 = vpack.c.bf16 %v1383_v20, %v1379_v13  ;;  %v1111_v24 = vpop.f32.mrb[92].mxu1 }
 0x1ae   :  { %v759_v26 = vadd.f32 %v758_v22, %v2666_v4  ;;  %v760_v27 = vpop.f32.mrb[93].mxu0  ;;  %v1112_v28 = vadd.f32 %v1111_v24, %v2668_v5  ;;  %v1113_v29 = vpop.f32.mrb[93].mxu1 }
 0x1af   :  { %v761_v30 = vadd.f32 %v760_v27, %v2670_v6  ;;  %v762_v31 = vpop.f32.mrb[94].mxu0  ;;  %v1114_v32 = vadd.f32 %v1113_v29, %v2672_v7  ;;  %v1115_v33 = vpop.f32.mrb[94].mxu1  ;;  %1667 = vmatprep.subr.bf16.mxu0 %v1546_v43  ;;  %1749 = vmatprep.subr.bf16.mxu1 %v1548_v23 }
 0x1b0   :  { %v763_v34 = vadd.f32 %v762_v31, %v2666_v4  ;;  %v1386_v35 = vmax.f32 %v1112_v28, 0.0  ;;  %v764_v38 = vpop.f32.mrb[95].mxu0  ;;  %v1116_v25 = vadd.f32 %v1115_v33, %v2668_v5  ;;  %v1117_v36 = vpop.f32.mrb[95].mxu1  ;;  %1668 = vmatpush1.bf16.msra.mxu0 %v1545_v1  ;;  %1750 = vmatpush1.bf16.msra.mxu1 %v1547_v21  ;;  %v1384_v41 = vmax.f32 %v759_v26, 0.0 }
 0x1b1   :  { %v765_v37 = vadd.f32 %v764_v38, %v2670_v6  ;;  %v1387_v39 = vmax.f32 %v1114_v32, 0.0  ;;  %v1118_v40 = vadd.f32 %v1117_v36, %v2672_v7  ;;  %v1385_v45 = vmax.f32 %v761_v30, 0.0 }
 0x1b2   :  { %v1388_v42 = vmax.f32 %v763_v34, 0.0  ;;  %v1390_v44 = vmax.f32 %v1116_v25, 0.0 }
 0x1b3   :  { %v1389_v46 = vmax.f32 %v765_v37, 0.0  ;;  %v1391_v47 = vmax.f32 %v1118_v40, 0.0 }
 0x1b4   :  { %v1549_v48 = vpack.c.bf16 %v1388_v42, %v1384_v41  ;;  %v1551_v50 = vpack.c.bf16 %v1390_v44, %v1386_v35 }
 0x1b5   :  { %v1550_v51 = vpack.c.bf16 %v1389_v46, %v1385_v45  ;;  %v768_v52 = vpop.f32.mrb[96].mxu0  ;;  %v1552_v53 = vpack.c.bf16 %v1391_v47, %v1387_v39  ;;  %v1121_v54 = vpop.f32.mrb[96].mxu1 }
 0x1b6   :  { %v769_v55 = vadd.f32 %v768_v52, %v2666_v4  ;;  %v770_v56 = vpop.f32.mrb[97].mxu0  ;;  %v1122_v57 = vadd.f32 %v1121_v54, %v2668_v5  ;;  %v1123_v58 = vpop.f32.mrb[97].mxu1 }
 0x1b7   :  { %v771_v59 = vadd.f32 %v770_v56, %v2670_v6  ;;  %v772_v60 = vpop.f32.mrb[98].mxu0  ;;  %v1124_v61 = vadd.f32 %v1123_v58, %v2672_v7  ;;  %v1125_v62 = vpop.f32.mrb[98].mxu1  ;;  %1669 = vmatprep.subr.bf16.mxu0 %v1550_v51  ;;  %1751 = vmatprep.subr.bf16.mxu1 %v1552_v53 }
 0x1b8   :  { %v773_v63 = vadd.f32 %v772_v60, %v2666_v4  ;;  %v1394_v0 = vmax.f32 %v1122_v57, 0.0  ;;  %v774_v2 = vpop.f32.mrb[99].mxu0  ;;  %v1126_v3 = vadd.f32 %v1125_v62, %v2668_v5  ;;  %v1127_v8 = vpop.f32.mrb[99].mxu1  ;;  %1670 = vmatpush1.bf16.msra.mxu0 %v1549_v48  ;;  %1752 = vmatpush1.bf16.msra.mxu1 %v1551_v50  ;;  %v1392_v12 = vmax.f32 %v769_v55, 0.0 }
 0x1b9   :  { %v775_v9 = vadd.f32 %v774_v2, %v2670_v6  ;;  %v1395_v10 = vmax.f32 %v1124_v61, 0.0  ;;  %v1128_v11 = vadd.f32 %v1127_v8, %v2672_v7  ;;  %v1393_v15 = vmax.f32 %v771_v59, 0.0 }
 0x1ba   :  { %v1396_v13 = vmax.f32 %v773_v63, 0.0  ;;  %v1398_v14 = vmax.f32 %v1126_v3, 0.0 }
 0x1bb   :  { %v1397_v16 = vmax.f32 %v775_v9, 0.0  ;;  %v1399_v17 = vmax.f32 %v1128_v11, 0.0 }
 0x1bc   :  { %v1553_v18 = vpack.c.bf16 %v1396_v13, %v1392_v12  ;;  %v1555_v19 = vpack.c.bf16 %v1398_v14, %v1394_v0 }
 0x1bd   :  { %v1554_v20 = vpack.c.bf16 %v1397_v16, %v1393_v15  ;;  %v778_v1 = vpop.f32.mrb[100].mxu0  ;;  %v1556_v21 = vpack.c.bf16 %v1399_v17, %v1395_v10  ;;  %v1131_v43 = vpop.f32.mrb[100].mxu1 }
 0x1be   :  { %v779_v22 = vadd.f32 %v778_v1, %v2666_v4  ;;  %v780_v23 = vpop.f32.mrb[101].mxu0  ;;  %v1132_v24 = vadd.f32 %v1131_v43, %v2668_v5  ;;  %v1133_v26 = vpop.f32.mrb[101].mxu1 }
 0x1bf   :  { %v781_v27 = vadd.f32 %v780_v23, %v2670_v6  ;;  %v782_v28 = vpop.f32.mrb[102].mxu0  ;;  %v1134_v29 = vadd.f32 %v1133_v26, %v2672_v7  ;;  %v1135_v30 = vpop.f32.mrb[102].mxu1  ;;  %1671 = vmatprep.subr.bf16.mxu0 %v1554_v20  ;;  %1753 = vmatprep.subr.bf16.mxu1 %v1556_v21 }
 0x1c0   :  { %v783_v31 = vadd.f32 %v782_v28, %v2666_v4  ;;  %v1402_v32 = vmax.f32 %v1132_v24, 0.0  ;;  %v784_v33 = vpop.f32.mrb[103].mxu0  ;;  %v1136_v34 = vadd.f32 %v1135_v30, %v2668_v5  ;;  %v1137_v35 = vpop.f32.mrb[103].mxu1  ;;  %1672 = vmatpush1.bf16.msra.mxu0 %v1553_v18  ;;  %1754 = vmatpush1.bf16.msra.mxu1 %v1555_v19  ;;  %v1400_v37 = vmax.f32 %v779_v22, 0.0 }
 0x1c1   :  { %v785_v38 = vadd.f32 %v784_v33, %v2670_v6  ;;  %v1403_v25 = vmax.f32 %v1134_v29, 0.0  ;;  %v1138_v36 = vadd.f32 %v1137_v35, %v2672_v7  ;;  %v1401_v41 = vmax.f32 %v781_v27, 0.0 }
 0x1c2   :  { %v1404_v39 = vmax.f32 %v783_v31, 0.0  ;;  %v1406_v40 = vmax.f32 %v1136_v34, 0.0 }
 0x1c3   :  { %v1405_v42 = vmax.f32 %v785_v38, 0.0  ;;  %v1407_v44 = vmax.f32 %v1138_v36, 0.0 }
 0x1c4   :  { %v1557_v45 = vpack.c.bf16 %v1404_v39, %v1400_v37  ;;  %v1559_v46 = vpack.c.bf16 %v1406_v40, %v1402_v32 }
 0x1c5   :  { %v1558_v47 = vpack.c.bf16 %v1405_v42, %v1401_v41  ;;  %v788_v48 = vpop.f32.mrb[104].mxu0  ;;  %v1560_v50 = vpack.c.bf16 %v1407_v44, %v1403_v25  ;;  %v1141_v51 = vpop.f32.mrb[104].mxu1 }
 0x1c6   :  { %v789_v52 = vadd.f32 %v788_v48, %v2666_v4  ;;  %v790_v53 = vpop.f32.mrb[105].mxu0  ;;  %v1142_v54 = vadd.f32 %v1141_v51, %v2668_v5  ;;  %v1143_v55 = vpop.f32.mrb[105].mxu1 }
 0x1c7   :  { %v791_v56 = vadd.f32 %v790_v53, %v2670_v6  ;;  %v792_v57 = vpop.f32.mrb[106].mxu0  ;;  %v1144_v58 = vadd.f32 %v1143_v55, %v2672_v7  ;;  %v1145_v59 = vpop.f32.mrb[106].mxu1  ;;  %1673 = vmatprep.subr.bf16.mxu0 %v1558_v47  ;;  %1755 = vmatprep.subr.bf16.mxu1 %v1560_v50 }
 0x1c8   :  { %v793_v60 = vadd.f32 %v792_v57, %v2666_v4  ;;  %v1410_v61 = vmax.f32 %v1142_v54, 0.0  ;;  %v794_v62 = vpop.f32.mrb[107].mxu0  ;;  %v1146_v63 = vadd.f32 %v1145_v59, %v2668_v5  ;;  %v1147_v0 = vpop.f32.mrb[107].mxu1  ;;  %1674 = vmatpush1.bf16.msra.mxu0 %v1557_v45  ;;  %1756 = vmatpush1.bf16.msra.mxu1 %v1559_v46  ;;  %v1408_v9 = vmax.f32 %v789_v52, 0.0 }
 0x1c9   :  { %v795_v2 = vadd.f32 %v794_v62, %v2670_v6  ;;  %v1411_v3 = vmax.f32 %v1144_v58, 0.0  ;;  %v1148_v8 = vadd.f32 %v1147_v0, %v2672_v7  ;;  %v1409_v12 = vmax.f32 %v791_v56, 0.0 }
 0x1ca   :  { %v1412_v10 = vmax.f32 %v793_v60, 0.0  ;;  %v1414_v11 = vmax.f32 %v1146_v63, 0.0 }
 0x1cb   :  { %v1413_v13 = vmax.f32 %v795_v2, 0.0  ;;  %v1415_v14 = vmax.f32 %v1148_v8, 0.0 }
 0x1cc   :  { %v1561_v15 = vpack.c.bf16 %v1412_v10, %v1408_v9  ;;  %v1563_v16 = vpack.c.bf16 %v1414_v11, %v1410_v61 }
 0x1cd   :  { %v1562_v17 = vpack.c.bf16 %v1413_v13, %v1409_v12  ;;  %v798_v18 = vpop.f32.mrb[108].mxu0  ;;  %v1564_v19 = vpack.c.bf16 %v1415_v14, %v1411_v3  ;;  %v1151_v20 = vpop.f32.mrb[108].mxu1 }
 0x1ce   :  { %v799_v1 = vadd.f32 %v798_v18, %v2666_v4  ;;  %v800_v21 = vpop.f32.mrb[109].mxu0  ;;  %v1152_v43 = vadd.f32 %v1151_v20, %v2668_v5  ;;  %v1153_v22 = vpop.f32.mrb[109].mxu1 }
 0x1cf   :  { %v801_v23 = vadd.f32 %v800_v21, %v2670_v6  ;;  %v802_v24 = vpop.f32.mrb[110].mxu0  ;;  %v1154_v26 = vadd.f32 %v1153_v22, %v2672_v7  ;;  %v1155_v27 = vpop.f32.mrb[110].mxu1  ;;  %1675 = vmatprep.subr.bf16.mxu0 %v1562_v17  ;;  %1757 = vmatprep.subr.bf16.mxu1 %v1564_v19 }
 0x1d0   :  { %v803_v28 = vadd.f32 %v802_v24, %v2666_v4  ;;  %v1418_v29 = vmax.f32 %v1152_v43, 0.0  ;;  %v804_v30 = vpop.f32.mrb[111].mxu0  ;;  %v1156_v31 = vadd.f32 %v1155_v27, %v2668_v5  ;;  %v1157_v32 = vpop.f32.mrb[111].mxu1  ;;  %1676 = vmatpush1.bf16.msra.mxu0 %v1561_v15  ;;  %1758 = vmatpush1.bf16.msra.mxu1 %v1563_v16  ;;  %v1416_v38 = vmax.f32 %v799_v1, 0.0 }
 0x1d1   :  { %v805_v33 = vadd.f32 %v804_v30, %v2670_v6  ;;  %v1419_v34 = vmax.f32 %v1154_v26, 0.0  ;;  %v1158_v35 = vadd.f32 %v1157_v32, %v2672_v7  ;;  %v1417_v37 = vmax.f32 %v801_v23, 0.0 }
 0x1d2   :  { %v1420_v25 = vmax.f32 %v803_v28, 0.0  ;;  %v1422_v36 = vmax.f32 %v1156_v31, 0.0 }
 0x1d3   :  { %v1421_v39 = vmax.f32 %v805_v33, 0.0  ;;  %v1423_v40 = vmax.f32 %v1158_v35, 0.0 }
 0x1d4   :  { %v1565_v41 = vpack.c.bf16 %v1420_v25, %v1416_v38  ;;  %v1567_v42 = vpack.c.bf16 %v1422_v36, %v1418_v29 }
 0x1d5   :  { %v1566_v44 = vpack.c.bf16 %v1421_v39, %v1417_v37  ;;  %v808_v45 = vpop.f32.mrb[112].mxu0  ;;  %v1568_v46 = vpack.c.bf16 %v1423_v40, %v1419_v34  ;;  %v1161_v47 = vpop.f32.mrb[112].mxu1 }
 0x1d6   :  { %v809_v48 = vadd.f32 %v808_v45, %v2666_v4  ;;  %v810_v50 = vpop.f32.mrb[113].mxu0  ;;  %v1162_v51 = vadd.f32 %v1161_v47, %v2668_v5  ;;  %v1163_v52 = vpop.f32.mrb[113].mxu1 }
 0x1d7   :  { %v811_v53 = vadd.f32 %v810_v50, %v2670_v6  ;;  %v812_v54 = vpop.f32.mrb[114].mxu0  ;;  %v1164_v55 = vadd.f32 %v1163_v52, %v2672_v7  ;;  %v1165_v56 = vpop.f32.mrb[114].mxu1  ;;  %1677 = vmatprep.subr.bf16.mxu0 %v1566_v44  ;;  %1759 = vmatprep.subr.bf16.mxu1 %v1568_v46 }
 0x1d8   :  { %v813_v57 = vadd.f32 %v812_v54, %v2666_v4  ;;  %v1426_v58 = vmax.f32 %v1162_v51, 0.0  ;;  %v814_v59 = vpop.f32.mrb[115].mxu0  ;;  %v1166_v60 = vadd.f32 %v1165_v56, %v2668_v5  ;;  %v1167_v61 = vpop.f32.mrb[115].mxu1  ;;  %1678 = vmatpush1.bf16.msra.mxu0 %v1565_v41  ;;  %1760 = vmatpush1.bf16.msra.mxu1 %v1567_v42  ;;  %v1424_v2 = vmax.f32 %v809_v48, 0.0 }
 0x1d9   :  { %v815_v62 = vadd.f32 %v814_v59, %v2670_v6  ;;  %v1427_v63 = vmax.f32 %v1164_v55, 0.0  ;;  %v1168_v0 = vadd.f32 %v1167_v61, %v2672_v7  ;;  %v1425_v9 = vmax.f32 %v811_v53, 0.0 }
 0x1da   :  { %v1428_v3 = vmax.f32 %v813_v57, 0.0  ;;  %v1430_v8 = vmax.f32 %v1166_v60, 0.0 }
 0x1db   :  { %v1429_v10 = vmax.f32 %v815_v62, 0.0  ;;  %v1431_v11 = vmax.f32 %v1168_v0, 0.0 }
 0x1dc   :  { %v1569_v12 = vpack.c.bf16 %v1428_v3, %v1424_v2  ;;  %v1571_v13 = vpack.c.bf16 %v1430_v8, %v1426_v58 }
 0x1dd   :  { %v1570_v14 = vpack.c.bf16 %v1429_v10, %v1425_v9  ;;  %v818_v15 = vpop.f32.mrb[116].mxu0  ;;  %v1572_v16 = vpack.c.bf16 %v1431_v11, %v1427_v63  ;;  %v1171_v17 = vpop.f32.mrb[116].mxu1 }
 0x1de   :  { %v819_v18 = vadd.f32 %v818_v15, %v2666_v4  ;;  %v820_v19 = vpop.f32.mrb[117].mxu0  ;;  %v1172_v20 = vadd.f32 %v1171_v17, %v2668_v5  ;;  %v1173_v1 = vpop.f32.mrb[117].mxu1 }
 0x1df   :  { %v821_v21 = vadd.f32 %v820_v19, %v2670_v6  ;;  %v822_v43 = vpop.f32.mrb[118].mxu0  ;;  %v1174_v22 = vadd.f32 %v1173_v1, %v2672_v7  ;;  %v1175_v23 = vpop.f32.mrb[118].mxu1  ;;  %1679 = vmatprep.subr.bf16.mxu0 %v1570_v14  ;;  %1761 = vmatprep.subr.bf16.mxu1 %v1572_v16 }
 0x1e0   :  { %v823_v24 = vadd.f32 %v822_v43, %v2666_v4  ;;  %v1434_v26 = vmax.f32 %v1172_v20, 0.0  ;;  %v824_v27 = vpop.f32.mrb[119].mxu0  ;;  %v1176_v28 = vadd.f32 %v1175_v23, %v2668_v5  ;;  %v1177_v29 = vpop.f32.mrb[119].mxu1  ;;  %1680 = vmatpush1.bf16.msra.mxu0 %v1569_v12  ;;  %1762 = vmatpush1.bf16.msra.mxu1 %v1571_v13  ;;  %v1432_v33 = vmax.f32 %v819_v18, 0.0 }
 0x1e1   :  { %v825_v30 = vadd.f32 %v824_v27, %v2670_v6  ;;  %v1435_v31 = vmax.f32 %v1174_v22, 0.0  ;;  %v1178_v32 = vadd.f32 %v1177_v29, %v2672_v7  ;;  %v1433_v38 = vmax.f32 %v821_v21, 0.0 }
 0x1e2   :  { %v1436_v34 = vmax.f32 %v823_v24, 0.0  ;;  %v1438_v35 = vmax.f32 %v1176_v28, 0.0 }
 0x1e3   :  { %v1437_v25 = vmax.f32 %v825_v30, 0.0  ;;  %v1439_v36 = vmax.f32 %v1178_v32, 0.0 }
 0x1e4   :  { %v1573_v37 = vpack.c.bf16 %v1436_v34, %v1432_v33  ;;  %v1575_v39 = vpack.c.bf16 %v1438_v35, %v1434_v26 }
 0x1e5   :  { %v1574_v40 = vpack.c.bf16 %v1437_v25, %v1433_v38  ;;  %v828_v41 = vpop.f32.mrb[120].mxu0  ;;  %v1576_v42 = vpack.c.bf16 %v1439_v36, %v1435_v31  ;;  %v1181_v44 = vpop.f32.mrb[120].mxu1 }
 0x1e6   :  { %v829_v45 = vadd.f32 %v828_v41, %v2666_v4  ;;  %v830_v46 = vpop.f32.mrb[121].mxu0  ;;  %v1182_v47 = vadd.f32 %v1181_v44, %v2668_v5  ;;  %v1183_v48 = vpop.f32.mrb[121].mxu1  ;;  %v2368_v41 = vld [vmem:[%s3085_s4 + $0x8] sm:$0xff]   ;;  %v2371_v44 = vld [vmem:[%s3085_s4 + $0x50] sm:$0xff]  }
 0x1e7   :  { %v831_v50 = vadd.f32 %v830_v46, %v2670_v6  ;;  %v832_v51 = vpop.f32.mrb[122].mxu0  ;;  %v1184_v52 = vadd.f32 %v1183_v48, %v2672_v7  ;;  %v1185_v53 = vpop.f32.mrb[122].mxu1  ;;  %1681 = vmatprep.subr.bf16.mxu0 %v1574_v40  ;;  %1763 = vmatprep.subr.bf16.mxu1 %v1576_v42  ;;  %v2367_v40 = vld [vmem:[%s3085_s4 + $0x48] sm:$0xff]   ;;  %v2372_v46 = vld [vmem:[%s3085_s4 + $0x10] sm:$0xff]   ;;  %v2375_v48 = vld [vmem:[%s3085_s4 + $0x58] sm:$0xff]  }
 0x1e8   :  { %v833_v54 = vadd.f32 %v832_v51, %v2666_v4  ;;  %v1442_v55 = vmax.f32 %v1182_v47, 0.0  ;;  %v834_v56 = vpop.f32.mrb[123].mxu0  ;;  %v1186_v57 = vadd.f32 %v1185_v53, %v2668_v5  ;;  %v1187_v58 = vpop.f32.mrb[123].mxu1  ;;  %1682 = vmatpush1.bf16.msra.mxu0 %v1573_v37  ;;  %1764 = vmatpush1.bf16.msra.mxu1 %v1575_v39  ;;  %v1440_v62 = vmax.f32 %v829_v45, 0.0  ;;  %v2364_v37 = vld [vmem:[%s3085_s4] sm:$0xff]   ;;  %v2370_v42 = vld [vmem:[%s3085_s4 + $0x88] sm:$0xff]  }
 0x1e9   :  { %v835_v59 = vadd.f32 %v834_v56, %v2670_v6  ;;  %v1443_v60 = vmax.f32 %v1184_v52, 0.0  ;;  %v1188_v61 = vadd.f32 %v1187_v58, %v2672_v7  ;;  %v1441_v2 = vmax.f32 %v831_v50, 0.0  ;;  %v2366_v39 = vld [vmem:[%s3085_s4 + $0x80] sm:$0xff]   ;;  %v2373_v45 = vld [vmem:[%s3085_s4 + $0xd0] sm:$0xff]   ;;  %v2377_v50 = vld [vmem:[%s3085_s4 + $0xd8] sm:$0xff]  }
 0x1ea   :  { %v1444_v63 = vmax.f32 %v833_v54, 0.0  ;;  %v1446_v0 = vmax.f32 %v1186_v57, 0.0  ;;  %v2374_v47 = vld [vmem:[%s3085_s4 + $0x90] sm:$0xff]   ;;  %v2376_v51 = vld [vmem:[%s3085_s4 + $0x18] sm:$0xff]   ;;  %v2379_v53 = vld [vmem:[%s3085_s4 + $0x60] sm:$0xff]  }
 0x1eb   :  { %v1445_v3 = vmax.f32 %v835_v59, 0.0  ;;  %v1447_v8 = vmax.f32 %v1188_v61, 0.0  ;;  %v2378_v52 = vld [vmem:[%s3085_s4 + $0x98] sm:$0xff]   ;;  %v2381_v54 = vld [vmem:[%s3085_s4 + $0xe0] sm:$0xff]   ;;  %v2383_v57 = vld [vmem:[%s3085_s4 + $0x68] sm:$0xff]  }
 0x1ec   :  { %v1577_v9 = vpack.c.bf16 %v1444_v63, %v1440_v62  ;;  %v1579_v10 = vpack.c.bf16 %v1446_v0, %v1442_v55  ;;  %v2380_v55 = vld [vmem:[%s3085_s4 + $0x20] sm:$0xff]   ;;  %v2385_v58 = vld [vmem:[%s3085_s4 + $0xe8] sm:$0xff]   ;;  %v2387_v61 = vld [vmem:[%s3085_s4 + $0x70] sm:$0xff]  }
 0x1ed   :  { %v1578_v11 = vpack.c.bf16 %v1445_v3, %v1441_v2  ;;  %v838_v12 = vpop.f32.mrb[124].mxu0  ;;  %v1580_v13 = vpack.c.bf16 %v1447_v8, %v1443_v60  ;;  %v1191_v14 = vpop.f32.mrb[124].mxu1  ;;  %v2382_v56 = vld [vmem:[%s3085_s4 + $0xa0] sm:$0xff]   ;;  %v2384_v59 = vld [vmem:[%s3085_s4 + $0x28] sm:$0xff]   ;;  %v2389_v62 = vld [vmem:[%s3085_s4 + $0xf0] sm:$0xff]  }
 0x1ee   :  { %v839_v15 = vadd.f32 %v838_v12, %v2666_v4  ;;  %v840_v16 = vpop.f32.mrb[125].mxu0  ;;  %v1192_v17 = vadd.f32 %v1191_v14, %v2668_v5  ;;  %v1193_v18 = vpop.f32.mrb[125].mxu1  ;;  %v2386_v60 = vld [vmem:[%s3085_s4 + $0xa8] sm:$0xff]   ;;  %v2388_v63 = vld [vmem:[%s3085_s4 + $0x30] sm:$0xff]   ;;  %v2391_v2 = vld [vmem:[%s3085_s4 + $0x78] sm:$0xff]  }
 0x1ef   :  { %v841_v19 = vadd.f32 %v840_v16, %v2670_v6  ;;  %v842_v20 = vpop.f32.mrb[126].mxu0  ;;  %v1194_v1 = vadd.f32 %v1193_v18, %v2672_v7  ;;  %v1195_v21 = vpop.f32.mrb[126].mxu1  ;;  %1683 = vmatprep.subr.bf16.mxu0 %v1578_v11  ;;  %1765 = vmatprep.subr.bf16.mxu1 %v1580_v13  ;;  %v2390_v0 = vld [vmem:[%s3085_s4 + $0xb0] sm:$0xff]   ;;  %v2393_v3 = vld [vmem:[%s3085_s4 + $0xf8] sm:$0xff]  }
 0x1f0   :  { %v843_v43 = vadd.f32 %v842_v20, %v2666_v4  ;;  %v1450_v22 = vmax.f32 %v1192_v17, 0.0  ;;  %v844_v23 = vpop.f32.mrb[127].mxu0  ;;  %v1196_v24 = vadd.f32 %v1195_v21, %v2668_v5  ;;  %v1197_v26 = vpop.f32.mrb[127].mxu1  ;;  %1684 = vmatpush1.bf16.msra.mxu0 %v1577_v9  ;;  %1766 = vmatpush1.bf16.msra.mxu1 %v1579_v10  ;;  %v1448_v30 = vmax.f32 %v839_v15, 0.0  ;;  %v2363_v5 = vld [vmem:[%s3085_s4 + $0x40] sm:$0xff]   ;;  %v2392_v8 = vld [vmem:[%s3085_s4 + $0x38] sm:$0xff]  }
 0x1f1   :  { %v845_v27 = vadd.f32 %v844_v23, %v2670_v6  ;;  %v1451_v28 = vmax.f32 %v1194_v1, 0.0  ;;  %v1198_v29 = vadd.f32 %v1197_v26, %v2672_v7  ;;  %v1449_v33 = vmax.f32 %v841_v19, 0.0  ;;  %v2365_v6 = vld [vmem:[%s3085_s4 + $0xc0] sm:$0xff]   ;;  %v2394_v9 = vld [vmem:[%s3085_s4 + $0xb8] sm:$0xff]  }
 0x1f2   :  { %v1452_v31 = vmax.f32 %v843_v43, 0.0  ;;  %v1454_v32 = vmax.f32 %v1196_v24, 0.0  ;;  %v1608_v7 = vcombine.high %v2703_v49, %v2703_v49  ;;  %v2369_v49 = vld [vmem:[%s3085_s4 + $0xc8] sm:$0xff]  }
 0x1f3   :  { %v1453_v34 = vmax.f32 %v845_v27, 0.0  ;;  %v1455_v35 = vmax.f32 %v1198_v29, 0.0 }
 0x1f4   :  { %v1581_v38 = vpack.c.bf16 %v1452_v31, %v1448_v30  ;;  %v1583_v4 = vpack.c.bf16 %v1454_v32, %v1450_v22  ;;  %v2196_v22 = vld [vmem:[%s3086_s5] ss:$0 sm:$0xff] }
 0x1f5   :  { %v1582_v25 = vpack.c.bf16 %v1453_v34, %v1449_v33  ;;  %v1584_v36 = vpack.c.bf16 %v1455_v35, %v1451_v28 }
 0x1f7   :  { %1685 = vmatprep.subr.bf16.mxu0 %v1582_v25  ;;  %1767 = vmatprep.subr.bf16.mxu1 %v1584_v36 }
 0x1f8   :  { %1686 = vmatpush1.bf16.msra.mxu0 %v1581_v38  ;;  %1768 = vmatpush1.bf16.msra.mxu1 %v1583_v4 }
 0x1f9   :  { %2229 = vmatprep.subr.bf16.mxu0 %v2363_v5  ;;  %2251 = vmatprep.subr.bf16.mxu1 %v2365_v6 }
 0x1fb   :  { %1688 = vmatmul.mubr.bf16.vlgmr.msra.gmra.mrb[128].mxu0 %v1608_v7  ;;  %1770 = vmatmul.mubr.bf16.vlgmr.msra.gmra.mrb[128].mxu1 %v1608_v7 }
 0x1fc   :  { %2230 = vmatpush3.bf16.msra.mxu0 %v2364_v37  ;;  %2252 = vmatpush3.bf16.msra.mxu1 %v2366_v39 }
 0x1fd   :  { %2231 = vmatprep.subr.bf16.mxu0 %v2367_v40  ;;  %2253 = vmatprep.subr.bf16.mxu1 %v2369_v49 }
 0x200   :  { %2232 = vmatpush3.bf16.msra.mxu0 %v2368_v41  ;;  %2254 = vmatpush3.bf16.msra.mxu1 %v2370_v42 }
 0x201   :  { %2233 = vmatprep.subr.bf16.mxu0 %v2371_v44  ;;  %2255 = vmatprep.subr.bf16.mxu1 %v2373_v45 }
 0x204   :  { %2234 = vmatpush3.bf16.msra.mxu0 %v2372_v46  ;;  %2256 = vmatpush3.bf16.msra.mxu1 %v2374_v47 }
 0x205   :  { %2235 = vmatprep.subr.bf16.mxu0 %v2375_v48  ;;  %2257 = vmatprep.subr.bf16.mxu1 %v2377_v50 }
 0x208   :  { %2236 = vmatpush3.bf16.msra.mxu0 %v2376_v51  ;;  %2258 = vmatpush3.bf16.msra.mxu1 %v2378_v52 }
 0x209   :  { %2237 = vmatprep.subr.bf16.mxu0 %v2379_v53  ;;  %2259 = vmatprep.subr.bf16.mxu1 %v2381_v54 }
 0x20c   :  { %2238 = vmatpush3.bf16.msra.mxu0 %v2380_v55  ;;  %2260 = vmatpush3.bf16.msra.mxu1 %v2382_v56 }
 0x20d   :  { %2239 = vmatprep.subr.bf16.mxu0 %v2383_v57  ;;  %2261 = vmatprep.subr.bf16.mxu1 %v2385_v58 }
 0x210   :  { %2240 = vmatpush3.bf16.msra.mxu0 %v2384_v59  ;;  %2262 = vmatpush3.bf16.msra.mxu1 %v2386_v60 }
 0x211   :  { %2241 = vmatprep.subr.bf16.mxu0 %v2387_v61  ;;  %2263 = vmatprep.subr.bf16.mxu1 %v2389_v62 }
 0x214   :  { %2242 = vmatpush3.bf16.msra.mxu0 %v2388_v63  ;;  %2264 = vmatpush3.bf16.msra.mxu1 %v2390_v0 }
 0x215   :  { %2243 = vmatprep.subr.bf16.mxu0 %v2391_v2  ;;  %2265 = vmatprep.subr.bf16.mxu1 %v2393_v3 }
 0x218   :  { %2244 = vmatpush3.bf16.msra.mxu0 %v2392_v8  ;;  %2266 = vmatpush3.bf16.msra.mxu1 %v2394_v9 }
 0x2ce   :  { %v1689_v10 = vpop.f32.mrb[128].mxu0  ;;  %v1771_v11 = vpop.f32.mrb[128].mxu1 }
 0x2cf   :  { %v1691_v12 = vpop.f32.mrb[129].mxu0  ;;  %v1773_v13 = vpop.f32.mrb[129].mxu1  ;;  %v1778_v18 = vpack.c.bf16 %v1689_v10, %v1689_v10  ;;  %v1780_v19 = vpack.c.bf16 %v1771_v11, %v1771_v11 }
 0x2d0   :  { %v1779_v14 = vpack.c.bf16 %v1691_v12, %v1691_v12  ;;  %v1781_v15 = vpack.c.bf16 %v1773_v13, %v1773_v13  ;;  %v1693_v16 = vpop.f32.mrb[130].mxu0  ;;  %v1775_v17 = vpop.f32.mrb[130].mxu1 }
 0x2d1   :  { %v1694_v20 = vpop.f32.mrb[131].mxu0  ;;  %v1776_v1 = vpop.f32.mrb[131].mxu1 }
 0x2d2   :  { %2077 = vmatprep.mubr.bf16.mxu0 %v1779_v14  ;;  %2117 = vmatprep.mubr.bf16.mxu1 %v1781_v15 }
 0x2d3   :  { %2078 = vmatmul.mubr.bf16.vlgmr.msra.gmra.mrb[132].mxu0 %v1778_v18  ;;  %2118 = vmatmul.mubr.bf16.vlgmr.msra.gmra.mrb[132].mxu1 %v1780_v19 }
 0x3a6   :  { %v2245_v21 = vpop.f32.mrb[132].mxu0  ;;  %v2267_v43 = vpop.f32.mrb[132].mxu1 }
 0x3a7   :  { %v2246_v23 = vpop.f32.mrb[133].mxu0  ;;  %v2268_v24 = vpop.f32.mrb[133].mxu1 }
 0x3a8   :  { %v2247_v26 = vadd.f32 %v2246_v23, %v2245_v21  ;;  %v2248_v27 = vpop.f32.mrb[134].mxu0  ;;  %v2269_v28 = vadd.f32 %v2268_v24, %v2267_v43  ;;  %v2270_v29 = vpop.f32.mrb[134].mxu1 }
 0x3a9   :  { %v2249_v30 = vpop.f32.mrb[135].mxu0  ;;  %v2271_v31 = vpop.f32.mrb[135].mxu1 }
 0x3aa   :  { %v2080_v32 = vadd.f32 %v2247_v26, %v2196_v22 }
 0x3ac   :  { %v2120_v33 = vadd.f32 %v2269_v28, %v2080_v32 }
 0x3ae   :  { %2126 = vst.msk [vmem:[%s3087_s6] sm:$0x3] %vm2125_vm0, %v2120_v33 }

</bundles_post_ra>
